<compile_context>
chip_gen: v7x
topology: tpu7x:2x2x1
jax: 0.10.0
libtpu: 0.0.40
codegen_flags: <defaults>
</compile_context>

<pallas_src>
import jax
import jax.numpy as jnp
from jax.experimental import pallas as pl
from jax.experimental.pallas import tpu as pltpu

OUT_PAD = 128  # lane-dense padded logits width (real out_dim = 46)


def _mlp_kernel(x_ref, w1_ref, b1_ref, w2_ref, b2_ref, w3_ref, b3_ref, o_ref):
    x = x_ref[...]                                    # (TB, 1792) bf16

    # Layer 1: bf16 @ bf16 -> f32 accumulate on the MXU, f32 bias, ReLU.
    h1 = jnp.dot(x, w1_ref[...], preferred_element_type=jnp.float32)
    h1 = jnp.maximum(h1 + b1_ref[...], 0.0)

    # Layer 2: (TB,512) @ (512,128), bf16 operands, f32 accumulate, ReLU.
    h2 = jnp.dot(h1.astype(jnp.bfloat16), w2_ref[...],
                 preferred_element_type=jnp.float32)
    h2 = jnp.maximum(h2 + b2_ref[...], 0.0)

    # Layer 3: (TB,128) @ (128,128-padded).  Padded columns carry bias -1e30
    # (finite in f32) -> exp underflows to exactly 0, so the 128-lane softmax
    # equals the 46-way softmax on the real columns.  Logits stay f32.
    logits = jnp.dot(h2.astype(jnp.bfloat16), w3_ref[...],
                     preferred_element_type=jnp.float32) + b3_ref[...]

    m = jnp.max(logits, axis=-1, keepdims=True)
    e = jnp.exp(logits - m)
    denom = jnp.sum(e, axis=-1, keepdims=True)
    # Exact division: rows must sum to 1 (approx reciprocal drifted ~1e-3).
    o_ref[...] = (e / denom).astype(o_ref.dtype)


def prepare_params(w1, b1, w2, b2, w3, b3):
    """One-time weight prep: bf16 weights, 2-D f32 biases, lane-padded layer 3."""
    out_dim = w3.shape[1]
    w1b = w1.astype(jnp.bfloat16)
    w2b = w2.astype(jnp.bfloat16)
    w3p = jnp.zeros((w3.shape[0], OUT_PAD), jnp.bfloat16)
    w3p = w3p.at[:, :out_dim].set(w3.astype(jnp.bfloat16))
    b1r = b1.reshape(1, -1).astype(jnp.float32)
    b2r = b2.reshape(1, -1).astype(jnp.float32)
    b3p = jnp.full((1, OUT_PAD), -1e30, jnp.float32)
    b3p = b3p.at[0, :out_dim].set(b3.astype(jnp.float32))
    return (w1b, b1r, w2b, b2r, w3p, b3p, out_dim)


def identity_forward(x, params, *, batch_tile=512):
    w1, b1, w2, b2, w3p, b3p, out_dim = params
    B, D = x.shape

    # Stream activations as bf16 (MXU-native operand, half the HBM traffic).
    x = x.astype(jnp.bfloat16)

    # Batch tiling: full-batch block (rounded to sublane multiple) for small B,
    # `batch_tile`-row tiles otherwise.
    TB = batch_tile if B >= batch_tile else max(8, ((B + 7) // 8) * 8)
    PB = pl.cdiv(B, TB) * TB
    if PB != B:
        x = jnp.pad(x, ((0, PB - B), (0, 0)))
    grid_len = PB // TB

    # Resident weights/biases: constant block index, single-buffered.
    def const(shape):
        return pl.BlockSpec(shape, lambda i: (0, 0), pipeline_mode=pl.Buffered(1))

    # Megacore-shard the batch axis only when there is more than one step
    # (otherwise each core would redundantly DMA the resident weights).
    sem = "parallel" if grid_len > 1 else "arbitrary"

    out = pl.pallas_call(
        _mlp_kernel,
        out_shape=jax.ShapeDtypeStruct((PB, OUT_PAD), jnp.float32),
        grid=(grid_len,),
        in_specs=[
            pl.BlockSpec((TB, D), lambda i: (i, 0)),     # x: tiled per step
            const(w1.shape), const(b1.shape),            # weights/biases resident
            const(w2.shape), const(b2.shape),
            const(w3p.shape), const(b3p.shape),
        ],
        out_specs=pl.BlockSpec((TB, OUT_PAD), lambda i: (i, 0)),
        compiler_params=pltpu.CompilerParams(
            dimension_semantics=(sem,)),
    )(x, w1, b1, w2, b2, w3p, b3p)

    return out[:B, :out_dim]


def init_linear(key, in_features, out_features):
    # Deterministic init mimicking nn.Linear default: U(-1/sqrt(in), 1/sqrt(in)).
    kw, kb = jax.random.split(key)
    bound = 1.0 / jnp.sqrt(jnp.float32(in_features))
    w = jax.random.uniform(kw, (in_features, out_features), jnp.float32,
                           minval=-bound, maxval=bound)
    b = jax.random.uniform(kb, (out_features,), jnp.float32,
                           minval=-bound, maxval=bound)
    return w, b


def _ref_forward(x, w1, b1, w2, b2, w3, b3):
    """Pure-JAX reference with the same bf16-operand / f32-accumulate numerics."""
    bf = jnp.bfloat16
    h1 = jnp.dot(x.astype(bf), w1.astype(bf),
                 preferred_element_type=jnp.float32) + b1
    h1 = jnp.maximum(h1, 0.0)
    h2 = jnp.dot(h1.astype(bf), w2.astype(bf),
                 preferred_element_type=jnp.float32) + b2
    h2 = jnp.maximum(h2, 0.0)
    logits = jnp.dot(h2.astype(bf), w3.astype(bf),
                     preferred_element_type=jnp.float32) + b3
    return jax.nn.softmax(logits, axis=-1)


if __name__ == "__main__":
    key = jax.random.PRNGKey(0)
    k_x, k1, k2, k3 = jax.random.split(key, 4)

    B = 8
    x = jax.random.normal(k_x, (B, 1792), jnp.float32)
    w1, b1 = init_linear(k1, 1792, 512)
    w2, b2 = init_linear(k2, 512, 128)
    w3, b3 = init_linear(k3, 128, 46)

    params = prepare_params(w1, b1, w2, b2, w3, b3)
    out = identity_forward(x, params)
    out = jax.block_until_ready(out)

    ref = _ref_forward(x, w1, b1, w2, b2, w3, b3)

    assert out.shape == (B, 46)
    assert jnp.allclose(out, ref, atol=2e-3, rtol=2e-3)
    assert jnp.allclose(jnp.sum(out, axis=-1), 1.0, atol=1e-3)

    print("KERNEL_OK")
</pallas_src>

<mosaic_0001>
module attributes {stable_mosaic.version = 11 : i64} {
  func.func @_mlp_kernel(%arg0: i32, %arg1: memref<8x1792xbf16, #tpu.memory_space<vmem>>, %arg2: memref<1792x512xbf16, #tpu.memory_space<vmem>>, %arg3: memref<1x512xf32, #tpu.memory_space<vmem>>, %arg4: memref<512x128xbf16, #tpu.memory_space<vmem>>, %arg5: memref<1x128xf32, #tpu.memory_space<vmem>>, %arg6: memref<128x128xbf16, #tpu.memory_space<vmem>>, %arg7: memref<1x128xf32, #tpu.memory_space<vmem>>, %arg8: memref<8x128xf32, #tpu.memory_space<vmem>>) attributes {dimension_semantics = [#tpu.dimension_semantics<arbitrary>], iteration_bounds = array<i64: 1>, scalar_prefetch = 0 : i64, scratch_operands = 0 : i64, tpu.core_type = #tpu.core_type<tc>, window_params = [{transform_indices = @transform_0, window_bounds = array<i64: 8, 1792>}, {pipeline_mode = #tpu.pipeline_mode<synchronous>, transform_indices = @transform_1, window_bounds = array<i64: 1792, 512>}, {pipeline_mode = #tpu.pipeline_mode<synchronous>, transform_indices = @transform_2, window_bounds = array<i64: 1, 512>}, {pipeline_mode = #tpu.pipeline_mode<synchronous>, transform_indices = @transform_3, window_bounds = array<i64: 512, 128>}, {pipeline_mode = #tpu.pipeline_mode<synchronous>, transform_indices = @transform_4, window_bounds = array<i64: 1, 128>}, {pipeline_mode = #tpu.pipeline_mode<synchronous>, transform_indices = @transform_5, window_bounds = array<i64: 128, 128>}, {pipeline_mode = #tpu.pipeline_mode<synchronous>, transform_indices = @transform_6, window_bounds = array<i64: 1, 128>}, {transform_indices = @transform_7, window_bounds = array<i64: 8, 128>}]} {
    %c0 = arith.constant 0 : index
    %c0_0 = arith.constant 0 : index
    %0 = vector.load %arg1[%c0, %c0_0] : memref<8x1792xbf16, #tpu.memory_space<vmem>>, vector<8x1792xbf16>
    %c0_1 = arith.constant 0 : index
    %c0_2 = arith.constant 0 : index
    %1 = vector.load %arg2[%c0_1, %c0_2] : memref<1792x512xbf16, #tpu.memory_space<vmem>>, vector<1792x512xbf16>
    %cst = arith.constant dense<0.000000e+00> : vector<8x512xf32>
    %2 = tpu.matmul %0, %1, %cst {dimension_numbers = #tpu.dot_dimension_numbers<[1], [0], [0], [1], [0, 0, 1, 1], [], []>} : vector<8x1792xbf16>, vector<1792x512xbf16>, vector<8x512xf32> -> vector<8x512xf32>
    %c0_3 = arith.constant 0 : index
    %c0_4 = arith.constant 0 : index
    %3 = vector.load %arg3[%c0_3, %c0_4] : memref<1x512xf32, #tpu.memory_space<vmem>>, vector<1x512xf32>
    %4 = vector.broadcast %3 : vector<1x512xf32> to vector<8x512xf32>
    %5 = arith.addf %2, %4 : vector<8x512xf32>
    %cst_5 = arith.constant 0.000000e+00 : f32
    %6 = vector.broadcast %cst_5 : f32 to vector<8x512xf32>
    %7 = arith.maximumf %5, %6 : vector<8x512xf32>
    %8 = arith.truncf %7 : vector<8x512xf32> to vector<8x512xbf16>
    %c0_6 = arith.constant 0 : index
    %c0_7 = arith.constant 0 : index
    %9 = vector.load %arg4[%c0_6, %c0_7] : memref<512x128xbf16, #tpu.memory_space<vmem>>, vector<512x128xbf16>
    %cst_8 = arith.constant dense<0.000000e+00> : vector<8x128xf32>
    %10 = tpu.matmul %8, %9, %cst_8 {dimension_numbers = #tpu.dot_dimension_numbers<[1], [0], [0], [1], [0, 0, 1, 1], [], []>} : vector<8x512xbf16>, vector<512x128xbf16>, vector<8x128xf32> -> vector<8x128xf32>
    %c0_9 = arith.constant 0 : index
    %c0_10 = arith.constant 0 : index
    %11 = vector.load %arg5[%c0_9, %c0_10] : memref<1x128xf32, #tpu.memory_space<vmem>>, vector<1x128xf32>
    %12 = vector.broadcast %11 : vector<1x128xf32> to vector<8x128xf32>
    %13 = arith.addf %10, %12 : vector<8x128xf32>
    %cst_11 = arith.constant 0.000000e+00 : f32
    %14 = vector.broadcast %cst_11 : f32 to vector<8x128xf32>
    %15 = arith.maximumf %13, %14 : vector<8x128xf32>
    %16 = arith.truncf %15 : vector<8x128xf32> to vector<8x128xbf16>
    %c0_12 = arith.constant 0 : index
    %c0_13 = arith.constant 0 : index
    %17 = vector.load %arg6[%c0_12, %c0_13] : memref<128x128xbf16, #tpu.memory_space<vmem>>, vector<128x128xbf16>
    %cst_14 = arith.constant dense<0.000000e+00> : vector<8x128xf32>
    %18 = tpu.matmul %16, %17, %cst_14 {dimension_numbers = #tpu.dot_dimension_numbers<[1], [0], [0], [1], [0, 0, 1, 1], [], []>} : vector<8x128xbf16>, vector<128x128xbf16>, vector<8x128xf32> -> vector<8x128xf32>
    %c0_15 = arith.constant 0 : index
    %c0_16 = arith.constant 0 : index
    %19 = vector.load %arg7[%c0_15, %c0_16] : memref<1x128xf32, #tpu.memory_space<vmem>>, vector<1x128xf32>
    %20 = vector.broadcast %19 : vector<1x128xf32> to vector<8x128xf32>
    %21 = arith.addf %18, %20 : vector<8x128xf32>
    %cst_17 = arith.constant dense<0xFF800000> : vector<8xf32>
    %22 = vector.multi_reduction <maximumf>, %21, %cst_17 [1] : vector<8x128xf32> to vector<8xf32>
    %23 = vector.shape_cast %22 : vector<8xf32> to vector<8x1xf32>
    %24 = vector.broadcast %23 : vector<8x1xf32> to vector<8x128xf32>
    %25 = arith.subf %21, %24 : vector<8x128xf32>
    %26 = math.exp %25 : vector<8x128xf32>
    %cst_18 = arith.constant dense<0.000000e+00> : vector<8xf32>
    %27 = vector.multi_reduction <add>, %26, %cst_18 [1] : vector<8x128xf32> to vector<8xf32>
    %28 = vector.shape_cast %27 : vector<8xf32> to vector<8x1xf32>
    %29 = vector.broadcast %28 : vector<8x1xf32> to vector<8x128xf32>
    %30 = arith.divf %26, %29 : vector<8x128xf32>
    %c0_19 = arith.constant 0 : index
    %c0_20 = arith.constant 0 : index
    %31 = vector.load %arg8[%c0_19, %c0_20] : memref<8x128xf32, #tpu.memory_space<vmem>>, vector<8x128xf32>
    tpu.vector_store %arg8[%c0_19, %c0_20], %30 {strides = array<i32>} : memref<8x128xf32, #tpu.memory_space<vmem>>, vector<8x128xf32>,
    return
  }
  func.func @transform_0(%arg0: i32) -> (i32, i32) {
    %c0_i32 = arith.constant 0 : i32
    %c0_i32_0 = arith.constant 0 : i32
    return %arg0, %c0_i32 : i32, i32
  }
  func.func @transform_1(%arg0: i32) -> (i32, i32) {
    %c0_i32 = arith.constant 0 : i32
    %c0_i32_0 = arith.constant 0 : i32
    %c0_i32_1 = arith.constant 0 : i32
    return %c0_i32, %c0_i32_0 : i32, i32
  }
  func.func @transform_2(%arg0: i32) -> (i32, i32) {
    %c0_i32 = arith.constant 0 : i32
    %c0_i32_0 = arith.constant 0 : i32
    %c0_i32_1 = arith.constant 0 : i32
    return %c0_i32, %c0_i32_0 : i32, i32
  }
  func.func @transform_3(%arg0: i32) -> (i32, i32) {
    %c0_i32 = arith.constant 0 : i32
    %c0_i32_0 = arith.constant 0 : i32
    %c0_i32_1 = arith.constant 0 : i32
    return %c0_i32, %c0_i32_0 : i32, i32
  }
  func.func @transform_4(%arg0: i32) -> (i32, i32) {
    %c0_i32 = arith.constant 0 : i32
    %c0_i32_0 = arith.constant 0 : i32
    %c0_i32_1 = arith.constant 0 : i32
    return %c0_i32, %c0_i32_0 : i32, i32
  }
  func.func @transform_5(%arg0: i32) -> (i32, i32) {
    %c0_i32 = arith.constant 0 : i32
    %c0_i32_0 = arith.constant 0 : i32
    %c0_i32_1 = arith.constant 0 : i32
    return %c0_i32, %c0_i32_0 : i32, i32
  }
  func.func @transform_6(%arg0: i32) -> (i32, i32) {
    %c0_i32 = arith.constant 0 : i32
    %c0_i32_0 = arith.constant 0 : i32
    %c0_i32_1 = arith.constant 0 : i32
    return %c0_i32, %c0_i32_0 : i32, i32
  }
  func.func @transform_7(%arg0: i32) -> (i32, i32) {
    %c0_i32 = arith.constant 0 : i32
    %c0_i32_0 = arith.constant 0 : i32
    return %arg0, %c0_i32 : i32, i32
  }
}

</mosaic_0001>

<bundles_post_ra>
// kernel: tpu_custom_call.1
= control target key start
LH: loop header
LB: loop body
LE: loop exit
PB: predicated region body
PF: predicated region fallthrough
CT: control target
= control target key end

     0   :  { %12 = vsyncpa [#allocation3], 0  ;;  %s5692_s0 = inlined_call_operand.hbm [shape: bf16[8,1792], index: 0, kind: input, shape index: {}]   ;;  %s5693_s1 = inlined_call_operand.hbm [shape: bf16[1792,512], index: 1, kind: input, shape index: {}]   ;;  %s5694_s2 = inlined_call_operand.hbm [shape: f32[1,512], index: 2, kind: input, shape index: {}]   ;;  %s5695_s3 = inlined_call_operand.hbm [shape: bf16[512,128], index: 3, kind: input, shape index: {}]   ;;  %s5696_s4 = inlined_call_operand.hbm [shape: f32[1,128], index: 4, kind: input, shape index: {}]   ;;  %s5697_s5 = inlined_call_operand.hbm [shape: bf16[128,128], index: 5, kind: input, shape index: {}]   ;;  %s5698_s6 = inlined_call_operand.hbm [shape: f32[1,128], index: 6, kind: input, shape index: {}]   ;;  %s5699_s7 = inlined_call_operand.hbm [shape: f32[8,128], index: 7, kind: output, shape index: {}]  }
   0x1   :  { %13 = vsyncpa [#allocation6], 0 }
   0x2   :  { %14 = vsyncpa [#allocation9], 0 }
   0x3   :  { %15 = vsyncpa [#allocation12], 0 }
   0x4   :  { %16 = vsyncpa [#allocation4], 0  ;;  %s5506_s24 = smov [#allocation5]   ;;  %s5320_s28 = scalar_lea.hbm %s5693_s1, 57344 }
   0x5   :  { %s32_s25 = sshll.u32 %s5506_s24, 4  ;;  %p5321_p0 = scmp.ne.s32.totalorder %s5693_s1, %s5320_s28  ;;  %s33_s25 = int_to_ptr.vmem [resolvable:$true] %s32_s25 }
   0x6   :  { %p5324_p1 = scmp.lt.u32.totalorder %s5320_s28, %s5693_s1 }
   0x8   :  { %p5326_p2 = pnand %p5324_p1, %p5321_p0 }
   0xa   :  { %5329 = shalt.err (!%p5326_p2)
}
   0xb   :  { %s5330_s10 = scalar_lea.vmem %s33_s25, 57344  ;;  %p5335_p4 = scmp.lt.s32.totalorder %s33_s25, %s33_s25 }
   0xc   :  { %p5331_p3 = scmp.ne.s32.totalorder %s33_s25, %s5330_s10  ;;  %p5336_p5 = scmp.lt.s32.totalorder %s5330_s10, %s5330_s10 }
   0xe   :  { %p5337_p6 = por %p5336_p5, %p5335_p4 }
  0x10   :  { %p5338_p7 = pnand %p5337_p6, %p5331_p3 }
  0x12   :  { %5341 = shalt.err (!%p5338_p7)
}
  0x13   :  { %s5507_s11 = smov 256   ;;  %s5508_s12 = smov 16  }
  0x14   :  { %38 = dma.hbm_to_vmem [thread:$0]  %s5693_s1, 57344, %s33_s25, [#allocation6], %s5507_s11, %s5507_s11, %s5508_s12  }
  0x15   :  { %s5509_s15 = smov [#allocation8]   ;;  %s5342_s19 = scalar_lea.hbm %s5695_s3, 4096 }
  0x16   :  { %s54_s16 = sshll.u32 %s5509_s15, 4  ;;  %p5343_p8 = scmp.ne.s32.totalorder %s5695_s3, %s5342_s19  ;;  %s55_s16 = int_to_ptr.vmem [resolvable:$true] %s54_s16 }
  0x17   :  { %p5346_p9 = scmp.lt.u32.totalorder %s5342_s19, %s5695_s3 }
  0x19   :  { %p5348_p10 = pnand %p5346_p9, %p5343_p8 }
  0x1b   :  { %5351 = shalt.err (!%p5348_p10)
}
  0x1c   :  { %s5352_s24 = scalar_lea.vmem %s55_s16, 4096  ;;  %p5357_p12 = scmp.lt.s32.totalorder %s55_s16, %s55_s16 }
  0x1d   :  { %p5353_p11 = scmp.ne.s32.totalorder %s55_s16, %s5352_s24  ;;  %p5358_p13 = scmp.lt.s32.totalorder %s5352_s24, %s5352_s24 }
  0x1f   :  { %p5359_p0 = por %p5358_p13, %p5357_p12 }
  0x21   :  { %p5360_p1 = pnand %p5359_p0, %p5353_p11 }
  0x23   :  { %5363 = shalt.err (!%p5360_p1)
}
  0x24   :  { %s5510_s1 = smov 64   ;;  %s5511_s25 = smov 4  }
  0x25   :  { %60 = dma.hbm_to_vmem [thread:$0]  %s5695_s3, 4096, %s55_s16, [#allocation9], %s5510_s1, %s5510_s1, %s5511_s25  }
  0x26   :  { %s5512_s28 = smov [#allocation11]   ;;  %s5513_s30 = smov [#allocation2]  }
  0x27   :  { %s76_s29 = sshll.u32 %s5512_s28, 4  ;;  %s23_s8 = sshll.u32 %s5513_s30, 4  ;;  %s77_s29 = int_to_ptr.vmem [resolvable:$true] %s76_s29  ;;  %s24_s8 = int_to_ptr.vmem [resolvable:$true] %s23_s8 }
  0x28   :  { %s5364_s11 = scalar_lea.hbm %s5697_s5, 1024 }
  0x29   :  { %p5365_p2 = scmp.ne.s32.totalorder %s5697_s5, %s5364_s11  ;;  %p5368_p3 = scmp.lt.u32.totalorder %s5364_s11, %s5697_s5 }
  0x2b   :  { %p5370_p4 = pnand %p5368_p3, %p5365_p2 }
  0x2d   :  { %5373 = shalt.err (!%p5370_p4)
}
  0x2e   :  { %s5374_s3 = scalar_lea.vmem %s77_s29, 1024  ;;  %p5379_p6 = scmp.lt.s32.totalorder %s77_s29, %s77_s29 }
  0x2f   :  { %p5375_p5 = scmp.ne.s32.totalorder %s77_s29, %s5374_s3  ;;  %p5380_p7 = scmp.lt.s32.totalorder %s5374_s3, %s5374_s3 }
  0x31   :  { %p5381_p8 = por %p5380_p7, %p5379_p6 }
  0x33   :  { %p5382_p9 = pnand %p5381_p8, %p5375_p5 }
  0x35   :  { %5385 = shalt.err (!%p5382_p9)
}
  0x36   :  { %82 = dma.hbm_to_vmem [thread:$0]  %s5697_s5, 1024, %s77_s29, [#allocation12], %s5510_s1, %s5510_s1, %s5511_s25  }
  0x37   :  { %s5386_s20 = scalar_lea.hbm %s5692_s0, 896 }
  0x38   :  { %p5387_p10 = scmp.ne.s32.totalorder %s5692_s0, %s5386_s20  ;;  %p5390_p11 = scmp.lt.u32.totalorder %s5386_s20, %s5692_s0 }
  0x3a   :  { %p5392_p12 = pnand %p5390_p11, %p5387_p10 }
  0x3c   :  { %5395 = shalt.err (!%p5392_p12)
}
  0x3d   :  { %s5396_s26 = scalar_lea.vmem %s24_s8, 896  ;;  %p5401_p0 = scmp.lt.s32.totalorder %s24_s8, %s24_s8 }
  0x3e   :  { %p5397_p13 = scmp.ne.s32.totalorder %s24_s8, %s5396_s26  ;;  %p5402_p1 = scmp.lt.s32.totalorder %s5396_s26, %s5396_s26 }
  0x40   :  { %p5403_p2 = por %p5402_p1, %p5401_p0 }
  0x42   :  { %p5404_p3 = pnand %p5403_p2, %p5397_p13 }
  0x44   :  { %5407 = shalt.err (!%p5404_p3)
}
  0x45   :  { %26 = dma.hbm_to_vmem [thread:$0]  %s5692_s0, 896, %s24_s8, [#allocation3]  }
  0x46   :  { %s5514_s25 = smov [#allocation7]   ;;  %s5515_s28 = smov [#allocation10]  }
  0x47   :  { %s45_s27 = sshll.u32 %s5514_s25, 4  ;;  %s67_s29 = sshll.u32 %s5515_s28, 4  ;;  %s46_s27 = int_to_ptr.vmem [resolvable:$true] %s45_s27  ;;  %s68_s29 = int_to_ptr.vmem [resolvable:$true] %s67_s29 }
  0x48   :  { %s5408_s10 = scalar_lea.hbm %s5694_s2, 64 }
  0x49   :  { %p5409_p4 = scmp.ne.s32.totalorder %s5694_s2, %s5408_s10  ;;  %p5412_p5 = scmp.lt.u32.totalorder %s5408_s10, %s5694_s2 }
  0x4b   :  { %p5414_p6 = pnand %p5412_p5, %p5409_p4 }
  0x4d   :  { %5417 = shalt.err (!%p5414_p6)
}
  0x4e   :  { %s5418_s0 = scalar_lea.vmem %s46_s27, 64  ;;  %p5423_p8 = scmp.lt.s32.totalorder %s46_s27, %s46_s27 }
  0x4f   :  { %p5419_p7 = scmp.ne.s32.totalorder %s46_s27, %s5418_s0  ;;  %p5424_p9 = scmp.lt.s32.totalorder %s5418_s0, %s5418_s0 }
  0x51   :  { %p5425_p10 = por %p5424_p9, %p5423_p8 }
  0x53   :  { %p5426_p11 = pnand %p5425_p10, %p5419_p7 }
  0x55   :  { %5429 = shalt.err (!%p5426_p11)
}
  0x56   :  { %48 = dma.hbm_to_vmem [thread:$0]  %s5694_s2, 64, %s46_s27, [#allocation6]  }
  0x57   :  { %s5430_s17 = scalar_lea.hbm %s5696_s4, 16 }
  0x58   :  { %p5431_p12 = scmp.ne.s32.totalorder %s5696_s4, %s5430_s17  ;;  %p5434_p13 = scmp.lt.u32.totalorder %s5430_s17, %s5696_s4 }
  0x5a   :  { %p5436_p0 = pnand %p5434_p13, %p5431_p12 }
  0x5c   :  { %5439 = shalt.err (!%p5436_p0)
}
  0x5d   :  { %s5440_s22 = scalar_lea.vmem %s68_s29, 16  ;;  %s5444_s23 = scalar_lea.vmem %s68_s29, 32 }
  0x5e   :  { %p5441_p1 = scmp.ne.s32.totalorder %s68_s29, %s5440_s22  ;;  %p5445_p2 = scmp.lt.s32.totalorder %s68_s29, %s68_s29 }
  0x5f   :  { %p5446_p3 = scmp.lt.s32.totalorder %s5444_s23, %s5440_s22 }
  0x61   :  { %p5447_p4 = por %p5446_p3, %p5445_p2 }
  0x63   :  { %p5448_p5 = pnand %p5447_p4, %p5441_p1 }
  0x65   :  { %5451 = shalt.err (!%p5448_p5)
}
  0x66   :  { %70 = dma.hbm_to_vmem [thread:$0]  %s5696_s4, 16, %s68_s29, [#allocation9]  }
  0x67   :  { %s5516_s26 = smov [#allocation13]   ;;  %s5452_s27 = scalar_lea.hbm %s5698_s6, 16 }
  0x68   :  { %s89_s5 = sshll.u32 %s5516_s26, 4  ;;  %p5453_p6 = scmp.ne.s32.totalorder %s5698_s6, %s5452_s27  ;;  %s90_s5 = int_to_ptr.vmem [resolvable:$true] %s89_s5 }
  0x69   :  { %p5456_p7 = scmp.lt.u32.totalorder %s5452_s27, %s5698_s6 }
  0x6b   :  { %p5458_p8 = pnand %p5456_p7, %p5453_p6 }
  0x6d   :  { %5461 = shalt.err (!%p5458_p8)
}
  0x6e   :  { %s5462_s11 = scalar_lea.vmem %s90_s5, 16  ;;  %s5466_s4 = scalar_lea.vmem %s90_s5, 32 }
  0x6f   :  { %p5463_p9 = scmp.ne.s32.totalorder %s90_s5, %s5462_s11  ;;  %p5467_p10 = scmp.lt.s32.totalorder %s90_s5, %s90_s5 }
  0x70   :  { %p5468_p11 = scmp.lt.s32.totalorder %s5466_s4, %s5462_s11 }
  0x72   :  { %p5469_p12 = por %p5468_p11, %p5467_p10 }
  0x74   :  { %p5470_p13 = pnand %p5469_p12, %p5463_p9 }
  0x76   :  { %5473 = shalt.err (!%p5470_p13)
}
  0x77   :  { %92 = dma.hbm_to_vmem [thread:$0]  %s5698_s6, 16, %s90_s5, [#allocation12]  }
  0x78   :  { %5496 = dma.done.wait [#allocation3], 896  }
  0x79   :  { %5497 = vsyncadd [#allocation3], 4294966400 }
  0x7a   :  { %5498 = dma.done.wait [#allocation6], 57408  }
  0x7b   :  { %5499 = vsyncadd [#allocation6], 4294909888 }
  0x7c   :  { %5500 = dma.done.wait [#allocation9], 4112  }
  0x7d   :  { %5501 = vsyncadd [#allocation9], 4294963184 }
  0x7e   :  { %5502 = dma.done.wait [#allocation12], 1040  }
  0x7f   :  { %5503 = vsyncadd [#allocation12], 4294966256  ;;  %v4590_v0 = vld [vmem:[#allocation5 + $0x4] ss:$16 sps:$4 sm:$0xff]   ;;  %v4592_v1 = vld [vmem:[#allocation5 + $0xc] ss:$16 sps:$4 sm:$0xff]  }
  0x80   :  { %2881 = vmatprep.subr.bf16.mxu0 %v4590_v0  ;;  %v4594_v2 = vld [vmem:[#allocation5] ss:$16 sps:$4 sm:$0xff]   ;;  %v4595_v3 = vld [vmem:[#allocation5 + $0x8] ss:$16 sps:$4 sm:$0xff]   ;;  %3168 = vmatprep.subr.bf16.mxu1 %v4592_v1  ;;  %v4596_v4 = vld [vmem:[#allocation5 + $0x24] ss:$16 sps:$4 sm:$0xff]  }
  0x81   :  { %2882 = vmatpush1.bf16.msra.mxu0 %v4594_v2  ;;  %3169 = vmatpush1.bf16.msra.mxu1 %v4595_v3  ;;  %v4598_v5 = vld [vmem:[#allocation5 + $0x2c] ss:$16 sps:$4 sm:$0xff]   ;;  %v4600_v6 = vld [vmem:[#allocation5 + $0x20] ss:$16 sps:$4 sm:$0xff]   ;;  %v4601_v7 = vld [vmem:[#allocation5 + $0x28] ss:$16 sps:$4 sm:$0xff]  }
  0x82   :  { %2883 = vmatprep.subr.bf16.mxu0 %v4596_v4  ;;  %3170 = vmatprep.subr.bf16.mxu1 %v4598_v5  ;;  %v4602_v8 = vld [vmem:[#allocation5 + $0x44] ss:$16 sps:$4 sm:$0xff]   ;;  %v4604_v9 = vld [vmem:[#allocation5 + $0x4c] ss:$16 sps:$4 sm:$0xff]   ;;  %v4606_v10 = vld [vmem:[#allocation5 + $0x40] ss:$16 sps:$4 sm:$0xff]  }
  0x83   :  { %v4607_v11 = vld [vmem:[#allocation5 + $0x48] ss:$16 sps:$4 sm:$0xff]   ;;  %v4608_v12 = vld [vmem:[#allocation5 + $0x64] ss:$16 sps:$4 sm:$0xff]   ;;  %v4610_v13 = vld [vmem:[#allocation5 + $0x6c] ss:$16 sps:$4 sm:$0xff]  }
  0x84   :  { %v4612_v14 = vld [vmem:[#allocation5 + $0x60] ss:$16 sps:$4 sm:$0xff]   ;;  %v4613_v15 = vld [vmem:[#allocation5 + $0x68] ss:$16 sps:$4 sm:$0xff]   ;;  %v4614_v16 = vld [vmem:[#allocation5 + $0x84] ss:$16 sps:$4 sm:$0xff]  }
  0x85   :  { %2884 = vmatpush1.bf16.msra.mxu0 %v4600_v6  ;;  %3171 = vmatpush1.bf16.msra.mxu1 %v4601_v7  ;;  %v4616_v17 = vld [vmem:[#allocation5 + $0x8c] ss:$16 sps:$4 sm:$0xff]   ;;  %v4618_v18 = vld [vmem:[#allocation5 + $0x80] ss:$16 sps:$4 sm:$0xff]   ;;  %v4619_v19 = vld [vmem:[#allocation5 + $0x88] ss:$16 sps:$4 sm:$0xff]  }
  0x86   :  { %2885 = vmatprep.subr.bf16.mxu0 %v4602_v8  ;;  %3172 = vmatprep.subr.bf16.mxu1 %v4604_v9  ;;  %v4620_v20 = vld [vmem:[#allocation5 + $0xa4] ss:$16 sps:$4 sm:$0xff]   ;;  %v4622_v21 = vld [vmem:[#allocation5 + $0xac] ss:$16 sps:$4 sm:$0xff]   ;;  %v4624_v22 = vld [vmem:[#allocation5 + $0xa0] ss:$16 sps:$4 sm:$0xff]  }
  0x87   :  { %v4625_v23 = vld [vmem:[#allocation5 + $0xa8] ss:$16 sps:$4 sm:$0xff]   ;;  %v4626_v24 = vld [vmem:[#allocation5 + $0xc4] ss:$16 sps:$4 sm:$0xff]   ;;  %v4628_v25 = vld [vmem:[#allocation5 + $0xcc] ss:$16 sps:$4 sm:$0xff]  }
  0x88   :  { %v4630_v26 = vld [vmem:[#allocation5 + $0xc0] ss:$16 sps:$4 sm:$0xff]   ;;  %v4631_v27 = vld [vmem:[#allocation5 + $0xc8] ss:$16 sps:$4 sm:$0xff]   ;;  %v4632_v28 = vld [vmem:[#allocation5 + $0xe4] ss:$16 sps:$4 sm:$0xff]  }
  0x89   :  { %2886 = vmatpush1.bf16.msra.mxu0 %v4606_v10  ;;  %3173 = vmatpush1.bf16.msra.mxu1 %v4607_v11  ;;  %v4634_v29 = vld [vmem:[#allocation5 + $0xec] ss:$16 sps:$4 sm:$0xff]   ;;  %v4636_v30 = vld [vmem:[#allocation5 + $0xe0] ss:$16 sps:$4 sm:$0xff]   ;;  %v4637_v31 = vld [vmem:[#allocation5 + $0xe8] ss:$16 sps:$4 sm:$0xff]  }
  0x8a   :  { %2887 = vmatprep.subr.bf16.mxu0 %v4608_v12  ;;  %3174 = vmatprep.subr.bf16.mxu1 %v4610_v13  ;;  %v4638_v32 = vld [vmem:[#allocation5 + $0x104] ss:$16 sps:$4 sm:$0xff]   ;;  %v4640_v33 = vld [vmem:[#allocation5 + $0x10c] ss:$16 sps:$4 sm:$0xff]   ;;  %v4642_v34 = vld [vmem:[#allocation5 + $0x100] ss:$16 sps:$4 sm:$0xff]  }
  0x8b   :  { %v4643_v35 = vld [vmem:[#allocation5 + $0x108] ss:$16 sps:$4 sm:$0xff]   ;;  %v4644_v36 = vld [vmem:[#allocation5 + $0x124] ss:$16 sps:$4 sm:$0xff]   ;;  %v4646_v37 = vld [vmem:[#allocation5 + $0x12c] ss:$16 sps:$4 sm:$0xff]  }
  0x8c   :  { %v4648_v38 = vld [vmem:[#allocation5 + $0x120] ss:$16 sps:$4 sm:$0xff]   ;;  %v4649_v39 = vld [vmem:[#allocation5 + $0x128] ss:$16 sps:$4 sm:$0xff]   ;;  %v4650_v40 = vld [vmem:[#allocation5 + $0x144] ss:$16 sps:$4 sm:$0xff]  }
  0x8d   :  { %2888 = vmatpush1.bf16.msra.mxu0 %v4612_v14  ;;  %3175 = vmatpush1.bf16.msra.mxu1 %v4613_v15  ;;  %v4652_v41 = vld [vmem:[#allocation5 + $0x14c] ss:$16 sps:$4 sm:$0xff]   ;;  %v4654_v42 = vld [vmem:[#allocation5 + $0x140] ss:$16 sps:$4 sm:$0xff]   ;;  %v4655_v43 = vld [vmem:[#allocation5 + $0x148] ss:$16 sps:$4 sm:$0xff]  }
  0x8e   :  { %2889 = vmatprep.subr.bf16.mxu0 %v4614_v16  ;;  %3176 = vmatprep.subr.bf16.mxu1 %v4616_v17  ;;  %v4656_v44 = vld [vmem:[#allocation5 + $0x164] ss:$16 sps:$4 sm:$0xff]   ;;  %v4658_v45 = vld [vmem:[#allocation5 + $0x16c] ss:$16 sps:$4 sm:$0xff]   ;;  %v4660_v47 = vld [vmem:[#allocation5 + $0x160] ss:$16 sps:$4 sm:$0xff]  }
  0x8f   :  { %v115_v46 = vld [vmem:[#allocation2] sm:$0xff]  ;;  %v4662_v50 = vld [vmem:[#allocation5 + $0x184] ss:$16 sps:$4 sm:$0xff]   ;;  %v4666_v52 = vld [vmem:[#allocation5 + $0x180] ss:$16 sps:$4 sm:$0xff]   ;;  %vm5518_vm0 = vmmov 0  }
  0x90   :  { %v3948_v48 = vcombine.high %v115_v46, %v115_v46  ;;  %v4661_v49 = vld [vmem:[#allocation5 + $0x168] ss:$16 sps:$4 sm:$0xff]   ;;  %v4664_v51 = vld [vmem:[#allocation5 + $0x18c] ss:$16 sps:$4 sm:$0xff]   ;;  %v4668_v54 = vld [vmem:[#allocation5 + $0x1a4] ss:$16 sps:$4 sm:$0xff]   ;;  %v3947_v4 = vcombine.low %v115_v46, %v115_v46 }
  0x91   :  { %2890 = vmatpush1.bf16.msra.mxu0 %v4618_v18  ;;  %3177 = vmatpush1.bf16.msra.mxu1 %v4619_v19  ;;  %v4667_v53 = vld [vmem:[#allocation5 + $0x188] ss:$16 sps:$4 sm:$0xff]   ;;  %v4670_v55 = vld [vmem:[#allocation5 + $0x1ac] ss:$16 sps:$4 sm:$0xff]   ;;  %v4672_v56 = vld [vmem:[#allocation5 + $0x1a0] ss:$16 sps:$4 sm:$0xff]  }
  0x92   :  { %2891 = vmatprep.subr.bf16.mxu0 %v4620_v20  ;;  %3178 = vmatprep.subr.bf16.mxu1 %v4622_v21  ;;  %v4673_v57 = vld [vmem:[#allocation5 + $0x1a8] ss:$16 sps:$4 sm:$0xff]   ;;  %v4674_v58 = vld [vmem:[#allocation5 + $0x1c4] ss:$16 sps:$4 sm:$0xff]   ;;  %v4676_v59 = vld [vmem:[#allocation5 + $0x1cc] ss:$16 sps:$4 sm:$0xff]  }
  0x93   :  { %2913 = vmatprep.mubr.bf16.mxu0 %v3948_v48  ;;  %3200 = vmatprep.mubr.bf16.mxu1 %v3948_v48  ;;  %v4678_v60 = vld [vmem:[#allocation5 + $0x1c0] ss:$16 sps:$4 sm:$0xff]   ;;  %v4679_v61 = vld [vmem:[#allocation5 + $0x1c8] ss:$16 sps:$4 sm:$0xff]   ;;  %v4680_v62 = vld [vmem:[#allocation5 + $0x1e4] ss:$16 sps:$4 sm:$0xff]  }
  0x94   :  { %v4682_v63 = vld [vmem:[#allocation5 + $0x1ec] ss:$16 sps:$4 sm:$0xff]   ;;  %v4684_v0 = vld [vmem:[#allocation5 + $0x1e0] ss:$16 sps:$4 sm:$0xff]   ;;  %v4685_v1 = vld [vmem:[#allocation5 + $0x1e8] ss:$16 sps:$4 sm:$0xff]  }
  0x95   :  { %2892 = vmatpush1.bf16.msra.mxu0 %v4624_v22  ;;  %3179 = vmatpush1.bf16.msra.mxu1 %v4625_v23  ;;  %v4690_v2 = vld [vmem:[#allocation5 + $0x204] ss:$16 sps:$4 sm:$0xff]   ;;  %v4693_v3 = vld [vmem:[#allocation5 + $0x20c] ss:$16 sps:$4 sm:$0xff]   ;;  %v4688_v5 = vld [vmem:[#allocation5 + $0x200] ss:$16 sps:$4 sm:$0xff]  }
  0x96   :  { %2893 = vmatprep.subr.bf16.mxu0 %v4626_v24  ;;  %3180 = vmatprep.subr.bf16.mxu1 %v4628_v25  ;;  %v4691_v6 = vld [vmem:[#allocation5 + $0x208] ss:$16 sps:$4 sm:$0xff]   ;;  %v4696_v7 = vld [vmem:[#allocation5 + $0x224] ss:$16 sps:$4 sm:$0xff]   ;;  %v4699_v8 = vld [vmem:[#allocation5 + $0x22c] ss:$16 sps:$4 sm:$0xff]  }
  0x97   :  { %v4694_v9 = vld [vmem:[#allocation5 + $0x220] ss:$16 sps:$4 sm:$0xff]   ;;  %v4697_v10 = vld [vmem:[#allocation5 + $0x228] ss:$16 sps:$4 sm:$0xff]   ;;  %v4702_v11 = vld [vmem:[#allocation5 + $0x244] ss:$16 sps:$4 sm:$0xff]  }
  0x98   :  { %v4705_v12 = vld [vmem:[#allocation5 + $0x24c] ss:$16 sps:$4 sm:$0xff]   ;;  %v4700_v13 = vld [vmem:[#allocation5 + $0x240] ss:$16 sps:$4 sm:$0xff]   ;;  %v4703_v14 = vld [vmem:[#allocation5 + $0x248] ss:$16 sps:$4 sm:$0xff]  }
  0x99   :  { %2894 = vmatpush1.bf16.msra.mxu0 %v4630_v26  ;;  %3181 = vmatpush1.bf16.msra.mxu1 %v4631_v27  ;;  %v4708_v15 = vld [vmem:[#allocation5 + $0x264] ss:$16 sps:$4 sm:$0xff]   ;;  %v4711_v16 = vld [vmem:[#allocation5 + $0x26c] ss:$16 sps:$4 sm:$0xff]   ;;  %v4706_v17 = vld [vmem:[#allocation5 + $0x260] ss:$16 sps:$4 sm:$0xff]  }
  0x9a   :  { %2895 = vmatprep.subr.bf16.mxu0 %v4632_v28  ;;  %3182 = vmatprep.subr.bf16.mxu1 %v4634_v29  ;;  %v4709_v18 = vld [vmem:[#allocation5 + $0x268] ss:$16 sps:$4 sm:$0xff]   ;;  %v4714_v19 = vld [vmem:[#allocation5 + $0x284] ss:$16 sps:$4 sm:$0xff]   ;;  %v4717_v20 = vld [vmem:[#allocation5 + $0x28c] ss:$16 sps:$4 sm:$0xff]  }
  0x9b   :  { %v4712_v21 = vld [vmem:[#allocation5 + $0x280] ss:$16 sps:$4 sm:$0xff]   ;;  %v4715_v22 = vld [vmem:[#allocation5 + $0x288] ss:$16 sps:$4 sm:$0xff]   ;;  %v4720_v23 = vld [vmem:[#allocation5 + $0x2a4] ss:$16 sps:$4 sm:$0xff]  }
  0x9c   :  { %v4723_v24 = vld [vmem:[#allocation5 + $0x2ac] ss:$16 sps:$4 sm:$0xff]   ;;  %v4718_v25 = vld [vmem:[#allocation5 + $0x2a0] ss:$16 sps:$4 sm:$0xff]   ;;  %v4721_v26 = vld [vmem:[#allocation5 + $0x2a8] ss:$16 sps:$4 sm:$0xff]  }
  0x9d   :  { %2896 = vmatpush1.bf16.msra.mxu0 %v4636_v30  ;;  %3183 = vmatpush1.bf16.msra.mxu1 %v4637_v31  ;;  %v4726_v27 = vld [vmem:[#allocation5 + $0x2c4] ss:$16 sps:$4 sm:$0xff]   ;;  %v4729_v28 = vld [vmem:[#allocation5 + $0x2cc] ss:$16 sps:$4 sm:$0xff]   ;;  %v4724_v31 = vld [vmem:[#allocation5 + $0x2c0] ss:$16 sps:$4 sm:$0xff]  }
  0x9e   :  { %2897 = vmatprep.subr.bf16.mxu0 %v4638_v32  ;;  %3184 = vmatprep.subr.bf16.mxu1 %v4640_v33  ;;  %v5644_v29 = vld [vmem:[#allocation2 + $0x8] sm:$0xff]  ;;  %v4727_v32 = vld [vmem:[#allocation5 + $0x2c8] ss:$16 sps:$4 sm:$0xff]   ;;  %v4753_v46 = vld [vmem:[#allocation5 + $0x34c] ss:$16 sps:$4 sm:$0xff]   ;;  %s5519_s6 = smov [#allocation14]  }
  0x9f   :  { %v3950_v30 = vcombine.high %v5644_v29, %v5644_v29  ;;  %v4732_v33 = vld [vmem:[#allocation5 + $0x2e4] ss:$16 sps:$4 sm:$0xff]   ;;  %v4751_v48 = vld [vmem:[#allocation5 + $0x348] ss:$16 sps:$4 sm:$0xff]   ;;  %s3935_s13 = sshll.u32 %s5519_s6, 4  ;;  %s3936_s13 = int_to_ptr.vmem [resolvable:$true] %s3935_s13 }
  0xa0   :  { %s5474_s14 = scalar_lea.vmem %s3936_s13, 128  ;;  %p5479_p1 = scmp.lt.s32.totalorder %s3936_s13, %s3936_s13 }
  0xa1   :  { %2898 = vmatpush1.bf16.msra.mxu0 %v4642_v34  ;;  %3185 = vmatpush1.bf16.msra.mxu1 %v4643_v35  ;;  %v4735_v34 = vld [vmem:[#allocation5 + $0x2ec] ss:$16 sps:$4 sm:$0xff]   ;;  %v4730_v35 = vld [vmem:[#allocation5 + $0x2e0] ss:$16 sps:$4 sm:$0xff]   ;;  %p5475_p0 = scmp.ne.s32.totalorder %s3936_s13, %s5474_s14  ;;  %p5480_p2 = scmp.lt.s32.totalorder %s5474_s14, %s5474_s14 }
  0xa2   :  { %2899 = vmatprep.subr.bf16.mxu0 %v4644_v36  ;;  %3186 = vmatprep.subr.bf16.mxu1 %v4646_v37  ;;  %v4733_v36 = vld [vmem:[#allocation5 + $0x2e8] ss:$16 sps:$4 sm:$0xff]   ;;  %v4738_v37 = vld [vmem:[#allocation5 + $0x304] ss:$16 sps:$4 sm:$0xff]  }
  0xa3   :  { %p5481_p3 = por %p5480_p2, %p5479_p1 }
  0xa5   :  { %2900 = vmatpush1.bf16.msra.mxu0 %v4648_v38  ;;  %3187 = vmatpush1.bf16.msra.mxu1 %v4649_v39  ;;  %v4741_v38 = vld [vmem:[#allocation5 + $0x30c] ss:$16 sps:$4 sm:$0xff]   ;;  %v4736_v39 = vld [vmem:[#allocation5 + $0x300] ss:$16 sps:$4 sm:$0xff]   ;;  %p5482_p4 = pnand %p5481_p3, %p5475_p0 }
  0xa6   :  { %2901 = vmatprep.subr.bf16.mxu0 %v4650_v40  ;;  %3188 = vmatprep.subr.bf16.mxu1 %v4652_v41  ;;  %v4739_v40 = vld [vmem:[#allocation5 + $0x308] ss:$16 sps:$4 sm:$0xff]   ;;  %v4744_v41 = vld [vmem:[#allocation5 + $0x324] ss:$16 sps:$4 sm:$0xff]  }
  0xa9   :  { %2902 = vmatpush1.bf16.msra.mxu0 %v4654_v42  ;;  %3189 = vmatpush1.bf16.msra.mxu1 %v4655_v43  ;;  %v4747_v42 = vld [vmem:[#allocation5 + $0x32c] ss:$16 sps:$4 sm:$0xff]   ;;  %v4742_v43 = vld [vmem:[#allocation5 + $0x320] ss:$16 sps:$4 sm:$0xff]  }
  0xaa   :  { %2903 = vmatprep.subr.bf16.mxu0 %v4656_v44  ;;  %3190 = vmatprep.subr.bf16.mxu1 %v4658_v45  ;;  %v4745_v44 = vld [vmem:[#allocation5 + $0x328] ss:$16 sps:$4 sm:$0xff]   ;;  %v4750_v45 = vld [vmem:[#allocation5 + $0x344] ss:$16 sps:$4 sm:$0xff]  }
  0xad   :  { %2904 = vmatpush1.bf16.msra.mxu0 %v4660_v47  ;;  %3191 = vmatpush1.bf16.msra.mxu1 %v4661_v49  ;;  %v4748_v47 = vld [vmem:[#allocation5 + $0x340] ss:$16 sps:$4 sm:$0xff]   ;;  %v4756_v49 = vld [vmem:[#allocation5 + $0x364] ss:$16 sps:$4 sm:$0xff]  }
  0xae   :  { %2905 = vmatprep.subr.bf16.mxu0 %v4662_v50  ;;  %3192 = vmatprep.subr.bf16.mxu1 %v4664_v51  ;;  %v4759_v50 = vld [vmem:[#allocation5 + $0x36c] ss:$16 sps:$4 sm:$0xff]   ;;  %v4754_v51 = vld [vmem:[#allocation5 + $0x360] ss:$16 sps:$4 sm:$0xff]  }
  0xb1   :  { %2906 = vmatpush1.bf16.msra.mxu0 %v4666_v52  ;;  %3193 = vmatpush1.bf16.msra.mxu1 %v4667_v53  ;;  %v4757_v52 = vld [vmem:[#allocation5 + $0x368] ss:$16 sps:$4 sm:$0xff]   ;;  %v4762_v53 = vld [vmem:[#allocation5 + $0x384] ss:$16 sps:$4 sm:$0xff]  }
  0xb2   :  { %2907 = vmatprep.subr.bf16.mxu0 %v4668_v54  ;;  %3194 = vmatprep.subr.bf16.mxu1 %v4670_v55  ;;  %v4765_v54 = vld [vmem:[#allocation5 + $0x38c] ss:$16 sps:$4 sm:$0xff]   ;;  %v4760_v55 = vld [vmem:[#allocation5 + $0x380] ss:$16 sps:$4 sm:$0xff]  }
  0xb5   :  { %2908 = vmatpush1.bf16.msra.mxu0 %v4672_v56  ;;  %3195 = vmatpush1.bf16.msra.mxu1 %v4673_v57  ;;  %v4763_v56 = vld [vmem:[#allocation5 + $0x388] ss:$16 sps:$4 sm:$0xff]   ;;  %v4768_v57 = vld [vmem:[#allocation5 + $0x3a4] ss:$16 sps:$4 sm:$0xff]  }
  0xb6   :  { %2909 = vmatprep.subr.bf16.mxu0 %v4674_v58  ;;  %3196 = vmatprep.subr.bf16.mxu1 %v4676_v59  ;;  %v4771_v58 = vld [vmem:[#allocation5 + $0x3ac] ss:$16 sps:$4 sm:$0xff]   ;;  %v4766_v59 = vld [vmem:[#allocation5 + $0x3a0] ss:$16 sps:$4 sm:$0xff]  }
  0xb9   :  { %2910 = vmatpush1.bf16.msra.mxu0 %v4678_v60  ;;  %3197 = vmatpush1.bf16.msra.mxu1 %v4679_v61  ;;  %v4769_v60 = vld [vmem:[#allocation5 + $0x3a8] ss:$16 sps:$4 sm:$0xff]   ;;  %v4774_v61 = vld [vmem:[#allocation5 + $0x3c4] ss:$16 sps:$4 sm:$0xff]  }
  0xba   :  { %2911 = vmatprep.subr.bf16.mxu0 %v4680_v62  ;;  %3198 = vmatprep.subr.bf16.mxu1 %v4682_v63  ;;  %v4777_v62 = vld [vmem:[#allocation5 + $0x3cc] ss:$16 sps:$4 sm:$0xff]   ;;  %v4772_v63 = vld [vmem:[#allocation5 + $0x3c0] ss:$16 sps:$4 sm:$0xff]  }
  0xbd   :  { %2912 = vmatpush1.bf16.msra.mxu0 %v4684_v0  ;;  %3199 = vmatpush1.bf16.msra.mxu1 %v4685_v1  ;;  %v4775_v0 = vld [vmem:[#allocation5 + $0x3c8] ss:$16 sps:$4 sm:$0xff]   ;;  %v4780_v1 = vld [vmem:[#allocation5 + $0x3e4] ss:$16 sps:$4 sm:$0xff]  }
  0xbe   :  { %2922 = vmatprep.subr.bf16.mxu0 %v4690_v2  ;;  %3209 = vmatprep.subr.bf16.mxu1 %v4693_v3  ;;  %v4783_v2 = vld [vmem:[#allocation5 + $0x3ec] ss:$16 sps:$4 sm:$0xff]   ;;  %v4778_v3 = vld [vmem:[#allocation5 + $0x3e0] ss:$16 sps:$4 sm:$0xff]  }
  0xc0   :  { %2914 = vmatmul.mubr.bf16.vlgmr.msra.gmra.mrb[0].mxu0 %v3947_v4  ;;  %3201 = vmatmul.mubr.bf16.vlgmr.msra.gmra.mrb[0].mxu1 %v3947_v4  ;;  %v4781_v4 = vld [vmem:[#allocation5 + $0x3e8] ss:$16 sps:$4 sm:$0xff]  }
  0xc1   :  { %2923 = vmatpush1.bf16.msra.mxu0 %v4688_v5  ;;  %3210 = vmatpush1.bf16.msra.mxu1 %v4691_v6  ;;  %v4788_v5 = vld [vmem:[#allocation5 + $0x404] ss:$16 sps:$4 sm:$0xff]   ;;  %v4791_v6 = vld [vmem:[#allocation5 + $0x40c] ss:$16 sps:$4 sm:$0xff]  }
  0xc2   :  { %2924 = vmatprep.subr.bf16.mxu0 %v4696_v7  ;;  %3211 = vmatprep.subr.bf16.mxu1 %v4699_v8  ;;  %v3949_v7 = vcombine.low %v5644_v29, %v5644_v29  ;;  %v4786_v8 = vld [vmem:[#allocation5 + $0x400] ss:$16 sps:$4 sm:$0xff]   ;;  %v4821_v29 = vld [vmem:[#allocation5 + $0x4ac] ss:$16 sps:$4 sm:$0xff]  }
  0xc3   :  { %2954 = vmatprep.mubr.bf16.mxu0 %v3950_v30  ;;  %3241 = vmatprep.mubr.bf16.mxu1 %v3950_v30  ;;  %v4816_v30 = vld [vmem:[#allocation5 + $0x4a0] ss:$16 sps:$4 sm:$0xff]  }
  0xc5   :  { %2925 = vmatpush1.bf16.msra.mxu0 %v4694_v9  ;;  %3212 = vmatpush1.bf16.msra.mxu1 %v4697_v10  ;;  %v4789_v9 = vld [vmem:[#allocation5 + $0x408] ss:$16 sps:$4 sm:$0xff]   ;;  %v4794_v10 = vld [vmem:[#allocation5 + $0x424] ss:$16 sps:$4 sm:$0xff]  }
  0xc6   :  { %2926 = vmatprep.subr.bf16.mxu0 %v4702_v11  ;;  %3213 = vmatprep.subr.bf16.mxu1 %v4705_v12  ;;  %v5650_v11 = vld [vmem:[#allocation2 + $0x10] sm:$0xff] }
  0xc7   :  { %v4797_v12 = vld [vmem:[#allocation5 + $0x42c] ss:$16 sps:$4 sm:$0xff]  }
  0xc9   :  { %2927 = vmatpush1.bf16.msra.mxu0 %v4700_v13  ;;  %3214 = vmatpush1.bf16.msra.mxu1 %v4703_v14  ;;  %v3952_v13 = vcombine.high %v5650_v11, %v5650_v11  ;;  %v4792_v14 = vld [vmem:[#allocation5 + $0x420] ss:$16 sps:$4 sm:$0xff]  }
  0xca   :  { %2928 = vmatprep.subr.bf16.mxu0 %v4708_v15  ;;  %3215 = vmatprep.subr.bf16.mxu1 %v4711_v16  ;;  %v4795_v15 = vld [vmem:[#allocation5 + $0x428] ss:$16 sps:$4 sm:$0xff]   ;;  %v4800_v16 = vld [vmem:[#allocation5 + $0x444] ss:$16 sps:$4 sm:$0xff]  }
  0xcd   :  { %2929 = vmatpush1.bf16.msra.mxu0 %v4706_v17  ;;  %3216 = vmatpush1.bf16.msra.mxu1 %v4709_v18  ;;  %v4803_v17 = vld [vmem:[#allocation5 + $0x44c] ss:$16 sps:$4 sm:$0xff]   ;;  %v4798_v18 = vld [vmem:[#allocation5 + $0x440] ss:$16 sps:$4 sm:$0xff]  }
  0xce   :  { %2930 = vmatprep.subr.bf16.mxu0 %v4714_v19  ;;  %3217 = vmatprep.subr.bf16.mxu1 %v4717_v20  ;;  %v4801_v19 = vld [vmem:[#allocation5 + $0x448] ss:$16 sps:$4 sm:$0xff]   ;;  %v4806_v20 = vld [vmem:[#allocation5 + $0x464] ss:$16 sps:$4 sm:$0xff]  }
  0xd1   :  { %2931 = vmatpush1.bf16.msra.mxu0 %v4712_v21  ;;  %3218 = vmatpush1.bf16.msra.mxu1 %v4715_v22  ;;  %v4809_v21 = vld [vmem:[#allocation5 + $0x46c] ss:$16 sps:$4 sm:$0xff]   ;;  %v4804_v22 = vld [vmem:[#allocation5 + $0x460] ss:$16 sps:$4 sm:$0xff]  }
  0xd2   :  { %2932 = vmatprep.subr.bf16.mxu0 %v4720_v23  ;;  %3219 = vmatprep.subr.bf16.mxu1 %v4723_v24  ;;  %v4807_v23 = vld [vmem:[#allocation5 + $0x468] ss:$16 sps:$4 sm:$0xff]   ;;  %v4812_v24 = vld [vmem:[#allocation5 + $0x484] ss:$16 sps:$4 sm:$0xff]  }
  0xd5   :  { %2933 = vmatpush1.bf16.msra.mxu0 %v4718_v25  ;;  %3220 = vmatpush1.bf16.msra.mxu1 %v4721_v26  ;;  %v4815_v25 = vld [vmem:[#allocation5 + $0x48c] ss:$16 sps:$4 sm:$0xff]   ;;  %v4810_v26 = vld [vmem:[#allocation5 + $0x480] ss:$16 sps:$4 sm:$0xff]  }
  0xd6   :  { %2934 = vmatprep.subr.bf16.mxu0 %v4726_v27  ;;  %3221 = vmatprep.subr.bf16.mxu1 %v4729_v28  ;;  %v4813_v27 = vld [vmem:[#allocation5 + $0x488] ss:$16 sps:$4 sm:$0xff]   ;;  %v4818_v28 = vld [vmem:[#allocation5 + $0x4a4] ss:$16 sps:$4 sm:$0xff]  }
  0xd9   :  { %2935 = vmatpush1.bf16.msra.mxu0 %v4724_v31  ;;  %3222 = vmatpush1.bf16.msra.mxu1 %v4727_v32  ;;  %v4819_v31 = vld [vmem:[#allocation5 + $0x4a8] ss:$16 sps:$4 sm:$0xff]   ;;  %v4824_v32 = vld [vmem:[#allocation5 + $0x4c4] ss:$16 sps:$4 sm:$0xff]  }
  0xda   :  { %2936 = vmatprep.subr.bf16.mxu0 %v4732_v33  ;;  %3223 = vmatprep.subr.bf16.mxu1 %v4735_v34  ;;  %v4827_v33 = vld [vmem:[#allocation5 + $0x4cc] ss:$16 sps:$4 sm:$0xff]   ;;  %v4822_v34 = vld [vmem:[#allocation5 + $0x4c0] ss:$16 sps:$4 sm:$0xff]  }
  0xdd   :  { %2937 = vmatpush1.bf16.msra.mxu0 %v4730_v35  ;;  %3224 = vmatpush1.bf16.msra.mxu1 %v4733_v36  ;;  %v4825_v35 = vld [vmem:[#allocation5 + $0x4c8] ss:$16 sps:$4 sm:$0xff]   ;;  %v4830_v36 = vld [vmem:[#allocation5 + $0x4e4] ss:$16 sps:$4 sm:$0xff]  }
  0xde   :  { %2938 = vmatprep.subr.bf16.mxu0 %v4738_v37  ;;  %3225 = vmatprep.subr.bf16.mxu1 %v4741_v38  ;;  %v4833_v37 = vld [vmem:[#allocation5 + $0x4ec] ss:$16 sps:$4 sm:$0xff]   ;;  %v4828_v38 = vld [vmem:[#allocation5 + $0x4e0] ss:$16 sps:$4 sm:$0xff]  }
  0xe1   :  { %2939 = vmatpush1.bf16.msra.mxu0 %v4736_v39  ;;  %3226 = vmatpush1.bf16.msra.mxu1 %v4739_v40  ;;  %v4831_v39 = vld [vmem:[#allocation5 + $0x4e8] ss:$16 sps:$4 sm:$0xff]   ;;  %v4836_v40 = vld [vmem:[#allocation5 + $0x504] ss:$16 sps:$4 sm:$0xff]  }
  0xe2   :  { %2940 = vmatprep.subr.bf16.mxu0 %v4744_v41  ;;  %3227 = vmatprep.subr.bf16.mxu1 %v4747_v42  ;;  %v4839_v41 = vld [vmem:[#allocation5 + $0x50c] ss:$16 sps:$4 sm:$0xff]   ;;  %v4834_v42 = vld [vmem:[#allocation5 + $0x500] ss:$16 sps:$4 sm:$0xff]  }
  0xe5   :  { %2941 = vmatpush1.bf16.msra.mxu0 %v4742_v43  ;;  %3228 = vmatpush1.bf16.msra.mxu1 %v4745_v44  ;;  %v4837_v43 = vld [vmem:[#allocation5 + $0x508] ss:$16 sps:$4 sm:$0xff]   ;;  %v4842_v44 = vld [vmem:[#allocation5 + $0x524] ss:$16 sps:$4 sm:$0xff]  }
  0xe6   :  { %2942 = vmatprep.subr.bf16.mxu0 %v4750_v45  ;;  %3229 = vmatprep.subr.bf16.mxu1 %v4753_v46  ;;  %v4845_v45 = vld [vmem:[#allocation5 + $0x52c] ss:$16 sps:$4 sm:$0xff]   ;;  %v4840_v46 = vld [vmem:[#allocation5 + $0x520] ss:$16 sps:$4 sm:$0xff]  }
  0xe9   :  { %2943 = vmatpush1.bf16.msra.mxu0 %v4748_v47  ;;  %3230 = vmatpush1.bf16.msra.mxu1 %v4751_v48  ;;  %v4843_v47 = vld [vmem:[#allocation5 + $0x528] ss:$16 sps:$4 sm:$0xff]   ;;  %v4848_v48 = vld [vmem:[#allocation5 + $0x544] ss:$16 sps:$4 sm:$0xff]  }
  0xea   :  { %2944 = vmatprep.subr.bf16.mxu0 %v4756_v49  ;;  %3231 = vmatprep.subr.bf16.mxu1 %v4759_v50  ;;  %v4851_v49 = vld [vmem:[#allocation5 + $0x54c] ss:$16 sps:$4 sm:$0xff]   ;;  %v4846_v50 = vld [vmem:[#allocation5 + $0x540] ss:$16 sps:$4 sm:$0xff]  }
  0xed   :  { %2945 = vmatpush1.bf16.msra.mxu0 %v4754_v51  ;;  %3232 = vmatpush1.bf16.msra.mxu1 %v4757_v52  ;;  %v4849_v51 = vld [vmem:[#allocation5 + $0x548] ss:$16 sps:$4 sm:$0xff]   ;;  %v4854_v52 = vld [vmem:[#allocation5 + $0x564] ss:$16 sps:$4 sm:$0xff]  }
  0xee   :  { %2946 = vmatprep.subr.bf16.mxu0 %v4762_v53  ;;  %3233 = vmatprep.subr.bf16.mxu1 %v4765_v54  ;;  %v4857_v53 = vld [vmem:[#allocation5 + $0x56c] ss:$16 sps:$4 sm:$0xff]   ;;  %v4852_v54 = vld [vmem:[#allocation5 + $0x560] ss:$16 sps:$4 sm:$0xff]  }
  0xf1   :  { %2947 = vmatpush1.bf16.msra.mxu0 %v4760_v55  ;;  %3234 = vmatpush1.bf16.msra.mxu1 %v4763_v56  ;;  %v4855_v55 = vld [vmem:[#allocation5 + $0x568] ss:$16 sps:$4 sm:$0xff]   ;;  %v4860_v56 = vld [vmem:[#allocation5 + $0x584] ss:$16 sps:$4 sm:$0xff]  }
  0xf2   :  { %2948 = vmatprep.subr.bf16.mxu0 %v4768_v57  ;;  %3235 = vmatprep.subr.bf16.mxu1 %v4771_v58  ;;  %v4863_v57 = vld [vmem:[#allocation5 + $0x58c] ss:$16 sps:$4 sm:$0xff]   ;;  %v4858_v58 = vld [vmem:[#allocation5 + $0x580] ss:$16 sps:$4 sm:$0xff]  }
  0xf5   :  { %2949 = vmatpush1.bf16.msra.mxu0 %v4766_v59  ;;  %3236 = vmatpush1.bf16.msra.mxu1 %v4769_v60  ;;  %v4861_v59 = vld [vmem:[#allocation5 + $0x588] ss:$16 sps:$4 sm:$0xff]   ;;  %v4866_v60 = vld [vmem:[#allocation5 + $0x5a4] ss:$16 sps:$4 sm:$0xff]  }
  0xf6   :  { %2950 = vmatprep.subr.bf16.mxu0 %v4774_v61  ;;  %3237 = vmatprep.subr.bf16.mxu1 %v4777_v62  ;;  %v4869_v61 = vld [vmem:[#allocation5 + $0x5ac] ss:$16 sps:$4 sm:$0xff]   ;;  %v4864_v62 = vld [vmem:[#allocation5 + $0x5a0] ss:$16 sps:$4 sm:$0xff]  }
  0xf9   :  { %2951 = vmatpush1.bf16.msra.mxu0 %v4772_v63  ;;  %3238 = vmatpush1.bf16.msra.mxu1 %v4775_v0  ;;  %v4867_v63 = vld [vmem:[#allocation5 + $0x5a8] ss:$16 sps:$4 sm:$0xff]   ;;  %v4872_v0 = vld [vmem:[#allocation5 + $0x5c4] ss:$16 sps:$4 sm:$0xff]  }
  0xfa   :  { %2952 = vmatprep.subr.bf16.mxu0 %v4780_v1  ;;  %3239 = vmatprep.subr.bf16.mxu1 %v4783_v2  ;;  %v4875_v1 = vld [vmem:[#allocation5 + $0x5cc] ss:$16 sps:$4 sm:$0xff]   ;;  %v4870_v2 = vld [vmem:[#allocation5 + $0x5c0] ss:$16 sps:$4 sm:$0xff]  }
  0xfd   :  { %2953 = vmatpush1.bf16.msra.mxu0 %v4778_v3  ;;  %3240 = vmatpush1.bf16.msra.mxu1 %v4781_v4  ;;  %v4873_v3 = vld [vmem:[#allocation5 + $0x5c8] ss:$16 sps:$4 sm:$0xff]   ;;  %v4878_v4 = vld [vmem:[#allocation5 + $0x5e4] ss:$16 sps:$4 sm:$0xff]  }
  0xfe   :  { %2963 = vmatprep.subr.bf16.mxu0 %v4788_v5  ;;  %3250 = vmatprep.subr.bf16.mxu1 %v4791_v6  ;;  %v4881_v5 = vld [vmem:[#allocation5 + $0x5ec] ss:$16 sps:$4 sm:$0xff]   ;;  %v4876_v6 = vld [vmem:[#allocation5 + $0x5e0] ss:$16 sps:$4 sm:$0xff]  }
 0x100   :  { %2955 = vmatmul.mubr.bf16.vlgmr.msra.gmra.mrb[0].mxu0 %v3949_v7  ;;  %3242 = vmatmul.mubr.bf16.vlgmr.msra.gmra.mrb[0].mxu1 %v3949_v7  ;;  %v4879_v7 = vld [vmem:[#allocation5 + $0x5e8] ss:$16 sps:$4 sm:$0xff]  }
 0x101   :  { %2964 = vmatpush1.bf16.msra.mxu0 %v4786_v8  ;;  %3251 = vmatpush1.bf16.msra.mxu1 %v4789_v9  ;;  %v4886_v8 = vld [vmem:[#allocation5 + $0x604] ss:$16 sps:$4 sm:$0xff]   ;;  %v4889_v9 = vld [vmem:[#allocation5 + $0x60c] ss:$16 sps:$4 sm:$0xff]  }
 0x102   :  { %2965 = vmatprep.subr.bf16.mxu0 %v4794_v10  ;;  %3252 = vmatprep.subr.bf16.mxu1 %v4797_v12  ;;  %v4884_v10 = vld [vmem:[#allocation5 + $0x600] ss:$16 sps:$4 sm:$0xff]   ;;  %v3951_v12 = vcombine.low %v5650_v11, %v5650_v11  ;;  %v4901_v11 = vld [vmem:[#allocation5 + $0x64c] ss:$16 sps:$4 sm:$0xff]  }
 0x103   :  { %2995 = vmatprep.mubr.bf16.mxu0 %v3952_v13  ;;  %3282 = vmatprep.mubr.bf16.mxu1 %v3952_v13  ;;  %v4887_v13 = vld [vmem:[#allocation5 + $0x608] ss:$16 sps:$4 sm:$0xff]  }
 0x105   :  { %2966 = vmatpush1.bf16.msra.mxu0 %v4792_v14  ;;  %3253 = vmatpush1.bf16.msra.mxu1 %v4795_v15  ;;  %v5656_v14 = vld [vmem:[#allocation2 + $0x18] sm:$0xff] }
 0x106   :  { %2967 = vmatprep.subr.bf16.mxu0 %v4800_v16  ;;  %3254 = vmatprep.subr.bf16.mxu1 %v4803_v17  ;;  %v4892_v15 = vld [vmem:[#allocation5 + $0x624] ss:$16 sps:$4 sm:$0xff]   ;;  %v4895_v16 = vld [vmem:[#allocation5 + $0x62c] ss:$16 sps:$4 sm:$0xff]   ;;  %v3954_v17 = vcombine.high %v5656_v14, %v5656_v14 }
 0x109   :  { %2968 = vmatpush1.bf16.msra.mxu0 %v4798_v18  ;;  %3255 = vmatpush1.bf16.msra.mxu1 %v4801_v19  ;;  %v4890_v18 = vld [vmem:[#allocation5 + $0x620] ss:$16 sps:$4 sm:$0xff]   ;;  %v4893_v19 = vld [vmem:[#allocation5 + $0x628] ss:$16 sps:$4 sm:$0xff]  }
 0x10a   :  { %2969 = vmatprep.subr.bf16.mxu0 %v4806_v20  ;;  %3256 = vmatprep.subr.bf16.mxu1 %v4809_v21  ;;  %v4898_v20 = vld [vmem:[#allocation5 + $0x644] ss:$16 sps:$4 sm:$0xff]   ;;  %v4896_v21 = vld [vmem:[#allocation5 + $0x640] ss:$16 sps:$4 sm:$0xff]  }
 0x10d   :  { %2970 = vmatpush1.bf16.msra.mxu0 %v4804_v22  ;;  %3257 = vmatpush1.bf16.msra.mxu1 %v4807_v23  ;;  %v4899_v22 = vld [vmem:[#allocation5 + $0x648] ss:$16 sps:$4 sm:$0xff]   ;;  %v4904_v23 = vld [vmem:[#allocation5 + $0x664] ss:$16 sps:$4 sm:$0xff]  }
 0x10e   :  { %2971 = vmatprep.subr.bf16.mxu0 %v4812_v24  ;;  %3258 = vmatprep.subr.bf16.mxu1 %v4815_v25  ;;  %v4907_v24 = vld [vmem:[#allocation5 + $0x66c] ss:$16 sps:$4 sm:$0xff]   ;;  %v4902_v25 = vld [vmem:[#allocation5 + $0x660] ss:$16 sps:$4 sm:$0xff]  }
 0x111   :  { %2972 = vmatpush1.bf16.msra.mxu0 %v4810_v26  ;;  %3259 = vmatpush1.bf16.msra.mxu1 %v4813_v27  ;;  %v4905_v26 = vld [vmem:[#allocation5 + $0x668] ss:$16 sps:$4 sm:$0xff]   ;;  %v4910_v27 = vld [vmem:[#allocation5 + $0x684] ss:$16 sps:$4 sm:$0xff]  }
 0x112   :  { %2973 = vmatprep.subr.bf16.mxu0 %v4818_v28  ;;  %3260 = vmatprep.subr.bf16.mxu1 %v4821_v29  ;;  %v4913_v28 = vld [vmem:[#allocation5 + $0x68c] ss:$16 sps:$4 sm:$0xff]   ;;  %v4908_v29 = vld [vmem:[#allocation5 + $0x680] ss:$16 sps:$4 sm:$0xff]  }
 0x115   :  { %2974 = vmatpush1.bf16.msra.mxu0 %v4816_v30  ;;  %3261 = vmatpush1.bf16.msra.mxu1 %v4819_v31  ;;  %v4911_v30 = vld [vmem:[#allocation5 + $0x688] ss:$16 sps:$4 sm:$0xff]   ;;  %v4916_v31 = vld [vmem:[#allocation5 + $0x6a4] ss:$16 sps:$4 sm:$0xff]  }
 0x116   :  { %2975 = vmatprep.subr.bf16.mxu0 %v4824_v32  ;;  %3262 = vmatprep.subr.bf16.mxu1 %v4827_v33  ;;  %v4919_v32 = vld [vmem:[#allocation5 + $0x6ac] ss:$16 sps:$4 sm:$0xff]   ;;  %v4914_v33 = vld [vmem:[#allocation5 + $0x6a0] ss:$16 sps:$4 sm:$0xff]  }
 0x119   :  { %2976 = vmatpush1.bf16.msra.mxu0 %v4822_v34  ;;  %3263 = vmatpush1.bf16.msra.mxu1 %v4825_v35  ;;  %v4917_v34 = vld [vmem:[#allocation5 + $0x6a8] ss:$16 sps:$4 sm:$0xff]   ;;  %v4922_v35 = vld [vmem:[#allocation5 + $0x6c4] ss:$16 sps:$4 sm:$0xff]  }
 0x11a   :  { %2977 = vmatprep.subr.bf16.mxu0 %v4830_v36  ;;  %3264 = vmatprep.subr.bf16.mxu1 %v4833_v37  ;;  %v4925_v36 = vld [vmem:[#allocation5 + $0x6cc] ss:$16 sps:$4 sm:$0xff]   ;;  %v4920_v37 = vld [vmem:[#allocation5 + $0x6c0] ss:$16 sps:$4 sm:$0xff]  }
 0x11d   :  { %2978 = vmatpush1.bf16.msra.mxu0 %v4828_v38  ;;  %3265 = vmatpush1.bf16.msra.mxu1 %v4831_v39  ;;  %v4923_v38 = vld [vmem:[#allocation5 + $0x6c8] ss:$16 sps:$4 sm:$0xff]   ;;  %v4928_v39 = vld [vmem:[#allocation5 + $0x6e4] ss:$16 sps:$4 sm:$0xff]  }
 0x11e   :  { %2979 = vmatprep.subr.bf16.mxu0 %v4836_v40  ;;  %3266 = vmatprep.subr.bf16.mxu1 %v4839_v41  ;;  %v4931_v40 = vld [vmem:[#allocation5 + $0x6ec] ss:$16 sps:$4 sm:$0xff]   ;;  %v4926_v41 = vld [vmem:[#allocation5 + $0x6e0] ss:$16 sps:$4 sm:$0xff]  }
 0x121   :  { %2980 = vmatpush1.bf16.msra.mxu0 %v4834_v42  ;;  %3267 = vmatpush1.bf16.msra.mxu1 %v4837_v43  ;;  %v4929_v42 = vld [vmem:[#allocation5 + $0x6e8] ss:$16 sps:$4 sm:$0xff]   ;;  %v4934_v43 = vld [vmem:[#allocation5 + $0x704] ss:$16 sps:$4 sm:$0xff]  }
 0x122   :  { %2981 = vmatprep.subr.bf16.mxu0 %v4842_v44  ;;  %3268 = vmatprep.subr.bf16.mxu1 %v4845_v45  ;;  %v4937_v44 = vld [vmem:[#allocation5 + $0x70c] ss:$16 sps:$4 sm:$0xff]   ;;  %v4932_v45 = vld [vmem:[#allocation5 + $0x700] ss:$16 sps:$4 sm:$0xff]  }
 0x125   :  { %2982 = vmatpush1.bf16.msra.mxu0 %v4840_v46  ;;  %3269 = vmatpush1.bf16.msra.mxu1 %v4843_v47  ;;  %v4935_v46 = vld [vmem:[#allocation5 + $0x708] ss:$16 sps:$4 sm:$0xff]   ;;  %v4940_v47 = vld [vmem:[#allocation5 + $0x724] ss:$16 sps:$4 sm:$0xff]  }
 0x126   :  { %2983 = vmatprep.subr.bf16.mxu0 %v4848_v48  ;;  %3270 = vmatprep.subr.bf16.mxu1 %v4851_v49  ;;  %v4943_v48 = vld [vmem:[#allocation5 + $0x72c] ss:$16 sps:$4 sm:$0xff]   ;;  %v4938_v49 = vld [vmem:[#allocation5 + $0x720] ss:$16 sps:$4 sm:$0xff]  }
 0x129   :  { %2984 = vmatpush1.bf16.msra.mxu0 %v4846_v50  ;;  %3271 = vmatpush1.bf16.msra.mxu1 %v4849_v51  ;;  %v4941_v50 = vld [vmem:[#allocation5 + $0x728] ss:$16 sps:$4 sm:$0xff]   ;;  %v4946_v51 = vld [vmem:[#allocation5 + $0x744] ss:$16 sps:$4 sm:$0xff]  }
 0x12a   :  { %2985 = vmatprep.subr.bf16.mxu0 %v4854_v52  ;;  %3272 = vmatprep.subr.bf16.mxu1 %v4857_v53  ;;  %v4949_v52 = vld [vmem:[#allocation5 + $0x74c] ss:$16 sps:$4 sm:$0xff]   ;;  %v4944_v53 = vld [vmem:[#allocation5 + $0x740] ss:$16 sps:$4 sm:$0xff]  }
 0x12d   :  { %2986 = vmatpush1.bf16.msra.mxu0 %v4852_v54  ;;  %3273 = vmatpush1.bf16.msra.mxu1 %v4855_v55  ;;  %v4947_v54 = vld [vmem:[#allocation5 + $0x748] ss:$16 sps:$4 sm:$0xff]   ;;  %v4952_v55 = vld [vmem:[#allocation5 + $0x764] ss:$16 sps:$4 sm:$0xff]  }
 0x12e   :  { %2987 = vmatprep.subr.bf16.mxu0 %v4860_v56  ;;  %3274 = vmatprep.subr.bf16.mxu1 %v4863_v57  ;;  %v4955_v56 = vld [vmem:[#allocation5 + $0x76c] ss:$16 sps:$4 sm:$0xff]   ;;  %v4950_v57 = vld [vmem:[#allocation5 + $0x760] ss:$16 sps:$4 sm:$0xff]  }
 0x131   :  { %2988 = vmatpush1.bf16.msra.mxu0 %v4858_v58  ;;  %3275 = vmatpush1.bf16.msra.mxu1 %v4861_v59  ;;  %v4953_v58 = vld [vmem:[#allocation5 + $0x768] ss:$16 sps:$4 sm:$0xff]   ;;  %v4958_v59 = vld [vmem:[#allocation5 + $0x784] ss:$16 sps:$4 sm:$0xff]  }
 0x132   :  { %2989 = vmatprep.subr.bf16.mxu0 %v4866_v60  ;;  %3276 = vmatprep.subr.bf16.mxu1 %v4869_v61  ;;  %v4961_v60 = vld [vmem:[#allocation5 + $0x78c] ss:$16 sps:$4 sm:$0xff]   ;;  %v4956_v61 = vld [vmem:[#allocation5 + $0x780] ss:$16 sps:$4 sm:$0xff]  }
 0x135   :  { %2990 = vmatpush1.bf16.msra.mxu0 %v4864_v62  ;;  %3277 = vmatpush1.bf16.msra.mxu1 %v4867_v63  ;;  %v4959_v62 = vld [vmem:[#allocation5 + $0x788] ss:$16 sps:$4 sm:$0xff]   ;;  %v4964_v63 = vld [vmem:[#allocation5 + $0x7a4] ss:$16 sps:$4 sm:$0xff]  }
 0x136   :  { %2991 = vmatprep.subr.bf16.mxu0 %v4872_v0  ;;  %3278 = vmatprep.subr.bf16.mxu1 %v4875_v1  ;;  %v4967_v0 = vld [vmem:[#allocation5 + $0x7ac] ss:$16 sps:$4 sm:$0xff]   ;;  %v4962_v1 = vld [vmem:[#allocation5 + $0x7a0] ss:$16 sps:$4 sm:$0xff]  }
 0x139   :  { %2992 = vmatpush1.bf16.msra.mxu0 %v4870_v2  ;;  %3279 = vmatpush1.bf16.msra.mxu1 %v4873_v3  ;;  %v4965_v2 = vld [vmem:[#allocation5 + $0x7a8] ss:$16 sps:$4 sm:$0xff]   ;;  %v4970_v3 = vld [vmem:[#allocation5 + $0x7c4] ss:$16 sps:$4 sm:$0xff]  }
 0x13a   :  { %2993 = vmatprep.subr.bf16.mxu0 %v4878_v4  ;;  %3280 = vmatprep.subr.bf16.mxu1 %v4881_v5  ;;  %v4973_v4 = vld [vmem:[#allocation5 + $0x7cc] ss:$16 sps:$4 sm:$0xff]   ;;  %v4968_v5 = vld [vmem:[#allocation5 + $0x7c0] ss:$16 sps:$4 sm:$0xff]  }
 0x13d   :  { %2994 = vmatpush1.bf16.msra.mxu0 %v4876_v6  ;;  %3281 = vmatpush1.bf16.msra.mxu1 %v4879_v7  ;;  %v4971_v6 = vld [vmem:[#allocation5 + $0x7c8] ss:$16 sps:$4 sm:$0xff]   ;;  %v4976_v7 = vld [vmem:[#allocation5 + $0x7e4] ss:$16 sps:$4 sm:$0xff]  }
 0x13e   :  { %3004 = vmatprep.subr.bf16.mxu0 %v4886_v8  ;;  %3291 = vmatprep.subr.bf16.mxu1 %v4889_v9  ;;  %v4979_v8 = vld [vmem:[#allocation5 + $0x7ec] ss:$16 sps:$4 sm:$0xff]   ;;  %v4974_v9 = vld [vmem:[#allocation5 + $0x7e0] ss:$16 sps:$4 sm:$0xff]  }
 0x140   :  { %2996 = vmatmul.mubr.bf16.vlgmr.msra.gmra.mrb[0].mxu0 %v3951_v12  ;;  %3283 = vmatmul.mubr.bf16.vlgmr.msra.gmra.mrb[0].mxu1 %v3951_v12  ;;  %v4984_v12 = vld [vmem:[#allocation5 + $0x804] ss:$16 sps:$4 sm:$0xff]  }
 0x141   :  { %3005 = vmatpush1.bf16.msra.mxu0 %v4884_v10  ;;  %3292 = vmatpush1.bf16.msra.mxu1 %v4887_v13  ;;  %v4977_v10 = vld [vmem:[#allocation5 + $0x7e8] ss:$16 sps:$4 sm:$0xff]   ;;  %v4987_v13 = vld [vmem:[#allocation5 + $0x80c] ss:$16 sps:$4 sm:$0xff]  }
 0x142   :  { %3006 = vmatprep.subr.bf16.mxu0 %v4892_v15  ;;  %3293 = vmatprep.subr.bf16.mxu1 %v4895_v16  ;;  %v4982_v15 = vld [vmem:[#allocation5 + $0x800] ss:$16 sps:$4 sm:$0xff]   ;;  %v3953_v16 = vcombine.low %v5656_v14, %v5656_v14  ;;  %v4996_v14 = vld [vmem:[#allocation5 + $0x844] ss:$16 sps:$4 sm:$0xff]  }
 0x143   :  { %3036 = vmatprep.mubr.bf16.mxu0 %v3954_v17  ;;  %3323 = vmatprep.mubr.bf16.mxu1 %v3954_v17  ;;  %v5662_v17 = vld [vmem:[#allocation2 + $0x20] sm:$0xff] }
 0x145   :  { %3007 = vmatpush1.bf16.msra.mxu0 %v4890_v18  ;;  %3294 = vmatpush1.bf16.msra.mxu1 %v4893_v19  ;;  %v4985_v18 = vld [vmem:[#allocation5 + $0x808] ss:$16 sps:$4 sm:$0xff]   ;;  %v4990_v19 = vld [vmem:[#allocation5 + $0x824] ss:$16 sps:$4 sm:$0xff]  }
 0x146   :  { %3008 = vmatprep.subr.bf16.mxu0 %v4898_v20  ;;  %3295 = vmatprep.subr.bf16.mxu1 %v4901_v11  ;;  %v4993_v20 = vld [vmem:[#allocation5 + $0x82c] ss:$16 sps:$4 sm:$0xff]   ;;  %v3956_v11 = vcombine.high %v5662_v17, %v5662_v17 }
 0x149   :  { %3009 = vmatpush1.bf16.msra.mxu0 %v4896_v21  ;;  %3296 = vmatpush1.bf16.msra.mxu1 %v4899_v22  ;;  %v4988_v21 = vld [vmem:[#allocation5 + $0x820] ss:$16 sps:$4 sm:$0xff]   ;;  %v4991_v22 = vld [vmem:[#allocation5 + $0x828] ss:$16 sps:$4 sm:$0xff]  }
 0x14a   :  { %3010 = vmatprep.subr.bf16.mxu0 %v4904_v23  ;;  %3297 = vmatprep.subr.bf16.mxu1 %v4907_v24  ;;  %v4999_v23 = vld [vmem:[#allocation5 + $0x84c] ss:$16 sps:$4 sm:$0xff]   ;;  %v4994_v24 = vld [vmem:[#allocation5 + $0x840] ss:$16 sps:$4 sm:$0xff]  }
 0x14d   :  { %3011 = vmatpush1.bf16.msra.mxu0 %v4902_v25  ;;  %3298 = vmatpush1.bf16.msra.mxu1 %v4905_v26  ;;  %v4997_v25 = vld [vmem:[#allocation5 + $0x848] ss:$16 sps:$4 sm:$0xff]   ;;  %v5002_v26 = vld [vmem:[#allocation5 + $0x864] ss:$16 sps:$4 sm:$0xff]  }
 0x14e   :  { %3012 = vmatprep.subr.bf16.mxu0 %v4910_v27  ;;  %3299 = vmatprep.subr.bf16.mxu1 %v4913_v28  ;;  %v5005_v27 = vld [vmem:[#allocation5 + $0x86c] ss:$16 sps:$4 sm:$0xff]   ;;  %v5000_v28 = vld [vmem:[#allocation5 + $0x860] ss:$16 sps:$4 sm:$0xff]  }
 0x151   :  { %3013 = vmatpush1.bf16.msra.mxu0 %v4908_v29  ;;  %3300 = vmatpush1.bf16.msra.mxu1 %v4911_v30  ;;  %v5003_v29 = vld [vmem:[#allocation5 + $0x868] ss:$16 sps:$4 sm:$0xff]   ;;  %v5008_v30 = vld [vmem:[#allocation5 + $0x884] ss:$16 sps:$4 sm:$0xff]  }
 0x152   :  { %3014 = vmatprep.subr.bf16.mxu0 %v4916_v31  ;;  %3301 = vmatprep.subr.bf16.mxu1 %v4919_v32  ;;  %v5011_v31 = vld [vmem:[#allocation5 + $0x88c] ss:$16 sps:$4 sm:$0xff]   ;;  %v5006_v32 = vld [vmem:[#allocation5 + $0x880] ss:$16 sps:$4 sm:$0xff]  }
 0x155   :  { %3015 = vmatpush1.bf16.msra.mxu0 %v4914_v33  ;;  %3302 = vmatpush1.bf16.msra.mxu1 %v4917_v34  ;;  %v5009_v33 = vld [vmem:[#allocation5 + $0x888] ss:$16 sps:$4 sm:$0xff]   ;;  %v5014_v34 = vld [vmem:[#allocation5 + $0x8a4] ss:$16 sps:$4 sm:$0xff]  }
 0x156   :  { %3016 = vmatprep.subr.bf16.mxu0 %v4922_v35  ;;  %3303 = vmatprep.subr.bf16.mxu1 %v4925_v36  ;;  %v5017_v35 = vld [vmem:[#allocation5 + $0x8ac] ss:$16 sps:$4 sm:$0xff]   ;;  %v5012_v36 = vld [vmem:[#allocation5 + $0x8a0] ss:$16 sps:$4 sm:$0xff]  }
 0x159   :  { %3017 = vmatpush1.bf16.msra.mxu0 %v4920_v37  ;;  %3304 = vmatpush1.bf16.msra.mxu1 %v4923_v38  ;;  %v5015_v37 = vld [vmem:[#allocation5 + $0x8a8] ss:$16 sps:$4 sm:$0xff]   ;;  %v5020_v38 = vld [vmem:[#allocation5 + $0x8c4] ss:$16 sps:$4 sm:$0xff]  }
 0x15a   :  { %3018 = vmatprep.subr.bf16.mxu0 %v4928_v39  ;;  %3305 = vmatprep.subr.bf16.mxu1 %v4931_v40  ;;  %v5023_v39 = vld [vmem:[#allocation5 + $0x8cc] ss:$16 sps:$4 sm:$0xff]   ;;  %v5018_v40 = vld [vmem:[#allocation5 + $0x8c0] ss:$16 sps:$4 sm:$0xff]  }
 0x15d   :  { %3019 = vmatpush1.bf16.msra.mxu0 %v4926_v41  ;;  %3306 = vmatpush1.bf16.msra.mxu1 %v4929_v42  ;;  %v5021_v41 = vld [vmem:[#allocation5 + $0x8c8] ss:$16 sps:$4 sm:$0xff]   ;;  %v5026_v42 = vld [vmem:[#allocation5 + $0x8e4] ss:$16 sps:$4 sm:$0xff]  }
 0x15e   :  { %3020 = vmatprep.subr.bf16.mxu0 %v4934_v43  ;;  %3307 = vmatprep.subr.bf16.mxu1 %v4937_v44  ;;  %v5029_v43 = vld [vmem:[#allocation5 + $0x8ec] ss:$16 sps:$4 sm:$0xff]   ;;  %v5024_v44 = vld [vmem:[#allocation5 + $0x8e0] ss:$16 sps:$4 sm:$0xff]  }
 0x161   :  { %3021 = vmatpush1.bf16.msra.mxu0 %v4932_v45  ;;  %3308 = vmatpush1.bf16.msra.mxu1 %v4935_v46  ;;  %v5027_v45 = vld [vmem:[#allocation5 + $0x8e8] ss:$16 sps:$4 sm:$0xff]   ;;  %v5032_v46 = vld [vmem:[#allocation5 + $0x904] ss:$16 sps:$4 sm:$0xff]  }
 0x162   :  { %3022 = vmatprep.subr.bf16.mxu0 %v4940_v47  ;;  %3309 = vmatprep.subr.bf16.mxu1 %v4943_v48  ;;  %v5035_v47 = vld [vmem:[#allocation5 + $0x90c] ss:$16 sps:$4 sm:$0xff]   ;;  %v5030_v48 = vld [vmem:[#allocation5 + $0x900] ss:$16 sps:$4 sm:$0xff]  }
 0x165   :  { %3023 = vmatpush1.bf16.msra.mxu0 %v4938_v49  ;;  %3310 = vmatpush1.bf16.msra.mxu1 %v4941_v50  ;;  %v5033_v49 = vld [vmem:[#allocation5 + $0x908] ss:$16 sps:$4 sm:$0xff]   ;;  %v5038_v50 = vld [vmem:[#allocation5 + $0x924] ss:$16 sps:$4 sm:$0xff]  }
 0x166   :  { %3024 = vmatprep.subr.bf16.mxu0 %v4946_v51  ;;  %3311 = vmatprep.subr.bf16.mxu1 %v4949_v52  ;;  %v5041_v51 = vld [vmem:[#allocation5 + $0x92c] ss:$16 sps:$4 sm:$0xff]   ;;  %v5036_v52 = vld [vmem:[#allocation5 + $0x920] ss:$16 sps:$4 sm:$0xff]  }
 0x169   :  { %3025 = vmatpush1.bf16.msra.mxu0 %v4944_v53  ;;  %3312 = vmatpush1.bf16.msra.mxu1 %v4947_v54  ;;  %v5039_v53 = vld [vmem:[#allocation5 + $0x928] ss:$16 sps:$4 sm:$0xff]   ;;  %v5044_v54 = vld [vmem:[#allocation5 + $0x944] ss:$16 sps:$4 sm:$0xff]  }
 0x16a   :  { %3026 = vmatprep.subr.bf16.mxu0 %v4952_v55  ;;  %3313 = vmatprep.subr.bf16.mxu1 %v4955_v56  ;;  %v5047_v55 = vld [vmem:[#allocation5 + $0x94c] ss:$16 sps:$4 sm:$0xff]   ;;  %v5042_v56 = vld [vmem:[#allocation5 + $0x940] ss:$16 sps:$4 sm:$0xff]  }
 0x16d   :  { %3027 = vmatpush1.bf16.msra.mxu0 %v4950_v57  ;;  %3314 = vmatpush1.bf16.msra.mxu1 %v4953_v58  ;;  %v5045_v57 = vld [vmem:[#allocation5 + $0x948] ss:$16 sps:$4 sm:$0xff]   ;;  %v5050_v58 = vld [vmem:[#allocation5 + $0x964] ss:$16 sps:$4 sm:$0xff]  }
 0x16e   :  { %3028 = vmatprep.subr.bf16.mxu0 %v4958_v59  ;;  %3315 = vmatprep.subr.bf16.mxu1 %v4961_v60  ;;  %v5053_v59 = vld [vmem:[#allocation5 + $0x96c] ss:$16 sps:$4 sm:$0xff]   ;;  %v5048_v60 = vld [vmem:[#allocation5 + $0x960] ss:$16 sps:$4 sm:$0xff]  }
 0x171   :  { %3029 = vmatpush1.bf16.msra.mxu0 %v4956_v61  ;;  %3316 = vmatpush1.bf16.msra.mxu1 %v4959_v62  ;;  %v5051_v61 = vld [vmem:[#allocation5 + $0x968] ss:$16 sps:$4 sm:$0xff]   ;;  %v5056_v62 = vld [vmem:[#allocation5 + $0x984] ss:$16 sps:$4 sm:$0xff]  }
 0x172   :  { %3030 = vmatprep.subr.bf16.mxu0 %v4964_v63  ;;  %3317 = vmatprep.subr.bf16.mxu1 %v4967_v0  ;;  %v5059_v63 = vld [vmem:[#allocation5 + $0x98c] ss:$16 sps:$4 sm:$0xff]   ;;  %v5054_v0 = vld [vmem:[#allocation5 + $0x980] ss:$16 sps:$4 sm:$0xff]  }
 0x175   :  { %3031 = vmatpush1.bf16.msra.mxu0 %v4962_v1  ;;  %3318 = vmatpush1.bf16.msra.mxu1 %v4965_v2  ;;  %v5057_v1 = vld [vmem:[#allocation5 + $0x988] ss:$16 sps:$4 sm:$0xff]   ;;  %v5062_v2 = vld [vmem:[#allocation5 + $0x9a4] ss:$16 sps:$4 sm:$0xff]  }
 0x176   :  { %3032 = vmatprep.subr.bf16.mxu0 %v4970_v3  ;;  %3319 = vmatprep.subr.bf16.mxu1 %v4973_v4  ;;  %v5065_v3 = vld [vmem:[#allocation5 + $0x9ac] ss:$16 sps:$4 sm:$0xff]   ;;  %v5060_v4 = vld [vmem:[#allocation5 + $0x9a0] ss:$16 sps:$4 sm:$0xff]  }
 0x179   :  { %3033 = vmatpush1.bf16.msra.mxu0 %v4968_v5  ;;  %3320 = vmatpush1.bf16.msra.mxu1 %v4971_v6  ;;  %v5063_v5 = vld [vmem:[#allocation5 + $0x9a8] ss:$16 sps:$4 sm:$0xff]   ;;  %v5068_v6 = vld [vmem:[#allocation5 + $0x9c4] ss:$16 sps:$4 sm:$0xff]  }
 0x17a   :  { %3034 = vmatprep.subr.bf16.mxu0 %v4976_v7  ;;  %3321 = vmatprep.subr.bf16.mxu1 %v4979_v8  ;;  %v5071_v7 = vld [vmem:[#allocation5 + $0x9cc] ss:$16 sps:$4 sm:$0xff]   ;;  %v5066_v8 = vld [vmem:[#allocation5 + $0x9c0] ss:$16 sps:$4 sm:$0xff]  }
 0x17d   :  { %3035 = vmatpush1.bf16.msra.mxu0 %v4974_v9  ;;  %3322 = vmatpush1.bf16.msra.mxu1 %v4977_v10  ;;  %v5069_v9 = vld [vmem:[#allocation5 + $0x9c8] ss:$16 sps:$4 sm:$0xff]   ;;  %v5074_v10 = vld [vmem:[#allocation5 + $0x9e4] ss:$16 sps:$4 sm:$0xff]  }
 0x17e   :  { %3045 = vmatprep.subr.bf16.mxu0 %v4984_v12  ;;  %3332 = vmatprep.subr.bf16.mxu1 %v4987_v13  ;;  %v5077_v12 = vld [vmem:[#allocation5 + $0x9ec] ss:$16 sps:$4 sm:$0xff]   ;;  %v5072_v13 = vld [vmem:[#allocation5 + $0x9e0] ss:$16 sps:$4 sm:$0xff]  }
 0x180   :  { %3037 = vmatmul.mubr.bf16.vlgmr.msra.gmra.mrb[0].mxu0 %v3953_v16  ;;  %3324 = vmatmul.mubr.bf16.vlgmr.msra.gmra.mrb[0].mxu1 %v3953_v16  ;;  %v5082_v16 = vld [vmem:[#allocation5 + $0xa04] ss:$16 sps:$4 sm:$0xff]  }
 0x181   :  { %3046 = vmatpush1.bf16.msra.mxu0 %v4982_v15  ;;  %3333 = vmatpush1.bf16.msra.mxu1 %v4985_v18  ;;  %v5075_v15 = vld [vmem:[#allocation5 + $0x9e8] ss:$16 sps:$4 sm:$0xff]   ;;  %v5085_v18 = vld [vmem:[#allocation5 + $0xa0c] ss:$16 sps:$4 sm:$0xff]  }
 0x182   :  { %3047 = vmatprep.subr.bf16.mxu0 %v4990_v19  ;;  %3334 = vmatprep.subr.bf16.mxu1 %v4993_v20  ;;  %v5080_v19 = vld [vmem:[#allocation5 + $0xa00] ss:$16 sps:$4 sm:$0xff]   ;;  %v5083_v20 = vld [vmem:[#allocation5 + $0xa08] ss:$16 sps:$4 sm:$0xff]  }
 0x183   :  { %3077 = vmatprep.mubr.bf16.mxu0 %v3956_v11  ;;  %3364 = vmatprep.mubr.bf16.mxu1 %v3956_v11  ;;  %v3955_v11 = vcombine.low %v5662_v17, %v5662_v17  ;;  %v5094_v17 = vld [vmem:[#allocation5 + $0xa44] ss:$16 sps:$4 sm:$0xff]  }
 0x185   :  { %3048 = vmatpush1.bf16.msra.mxu0 %v4988_v21  ;;  %3335 = vmatpush1.bf16.msra.mxu1 %v4991_v22  ;;  %v5088_v21 = vld [vmem:[#allocation5 + $0xa24] ss:$16 sps:$4 sm:$0xff]   ;;  %v5091_v22 = vld [vmem:[#allocation5 + $0xa2c] ss:$16 sps:$4 sm:$0xff]  }
 0x186   :  { %3049 = vmatprep.subr.bf16.mxu0 %v4996_v14  ;;  %3336 = vmatprep.subr.bf16.mxu1 %v4999_v23  ;;  %v5668_v14 = vld [vmem:[#allocation2 + $0x28] sm:$0xff] }
 0x187   :  { %v3958_v23 = vcombine.high %v5668_v14, %v5668_v14 }
 0x189   :  { %3050 = vmatpush1.bf16.msra.mxu0 %v4994_v24  ;;  %3337 = vmatpush1.bf16.msra.mxu1 %v4997_v25  ;;  %v5086_v24 = vld [vmem:[#allocation5 + $0xa20] ss:$16 sps:$4 sm:$0xff]   ;;  %v5089_v25 = vld [vmem:[#allocation5 + $0xa28] ss:$16 sps:$4 sm:$0xff]  }
 0x18a   :  { %3051 = vmatprep.subr.bf16.mxu0 %v5002_v26  ;;  %3338 = vmatprep.subr.bf16.mxu1 %v5005_v27  ;;  %v5097_v26 = vld [vmem:[#allocation5 + $0xa4c] ss:$16 sps:$4 sm:$0xff]   ;;  %v5092_v27 = vld [vmem:[#allocation5 + $0xa40] ss:$16 sps:$4 sm:$0xff]  }
 0x18d   :  { %3052 = vmatpush1.bf16.msra.mxu0 %v5000_v28  ;;  %3339 = vmatpush1.bf16.msra.mxu1 %v5003_v29  ;;  %v5095_v28 = vld [vmem:[#allocation5 + $0xa48] ss:$16 sps:$4 sm:$0xff]   ;;  %v5100_v29 = vld [vmem:[#allocation5 + $0xa64] ss:$16 sps:$4 sm:$0xff]  }
 0x18e   :  { %3053 = vmatprep.subr.bf16.mxu0 %v5008_v30  ;;  %3340 = vmatprep.subr.bf16.mxu1 %v5011_v31  ;;  %v5103_v30 = vld [vmem:[#allocation5 + $0xa6c] ss:$16 sps:$4 sm:$0xff]   ;;  %v5098_v31 = vld [vmem:[#allocation5 + $0xa60] ss:$16 sps:$4 sm:$0xff]  }
 0x191   :  { %3054 = vmatpush1.bf16.msra.mxu0 %v5006_v32  ;;  %3341 = vmatpush1.bf16.msra.mxu1 %v5009_v33  ;;  %v5101_v32 = vld [vmem:[#allocation5 + $0xa68] ss:$16 sps:$4 sm:$0xff]   ;;  %v5106_v33 = vld [vmem:[#allocation5 + $0xa84] ss:$16 sps:$4 sm:$0xff]  }
 0x192   :  { %3055 = vmatprep.subr.bf16.mxu0 %v5014_v34  ;;  %3342 = vmatprep.subr.bf16.mxu1 %v5017_v35  ;;  %v5109_v34 = vld [vmem:[#allocation5 + $0xa8c] ss:$16 sps:$4 sm:$0xff]   ;;  %v5104_v35 = vld [vmem:[#allocation5 + $0xa80] ss:$16 sps:$4 sm:$0xff]  }
 0x195   :  { %3056 = vmatpush1.bf16.msra.mxu0 %v5012_v36  ;;  %3343 = vmatpush1.bf16.msra.mxu1 %v5015_v37  ;;  %v5107_v36 = vld [vmem:[#allocation5 + $0xa88] ss:$16 sps:$4 sm:$0xff]   ;;  %v5112_v37 = vld [vmem:[#allocation5 + $0xaa4] ss:$16 sps:$4 sm:$0xff]  }
 0x196   :  { %3057 = vmatprep.subr.bf16.mxu0 %v5020_v38  ;;  %3344 = vmatprep.subr.bf16.mxu1 %v5023_v39  ;;  %v5115_v38 = vld [vmem:[#allocation5 + $0xaac] ss:$16 sps:$4 sm:$0xff]   ;;  %v5110_v39 = vld [vmem:[#allocation5 + $0xaa0] ss:$16 sps:$4 sm:$0xff]  }
 0x199   :  { %3058 = vmatpush1.bf16.msra.mxu0 %v5018_v40  ;;  %3345 = vmatpush1.bf16.msra.mxu1 %v5021_v41  ;;  %v5113_v40 = vld [vmem:[#allocation5 + $0xaa8] ss:$16 sps:$4 sm:$0xff]   ;;  %v5118_v41 = vld [vmem:[#allocation5 + $0xac4] ss:$16 sps:$4 sm:$0xff]  }
 0x19a   :  { %3059 = vmatprep.subr.bf16.mxu0 %v5026_v42  ;;  %3346 = vmatprep.subr.bf16.mxu1 %v5029_v43  ;;  %v5121_v42 = vld [vmem:[#allocation5 + $0xacc] ss:$16 sps:$4 sm:$0xff]   ;;  %v5116_v43 = vld [vmem:[#allocation5 + $0xac0] ss:$16 sps:$4 sm:$0xff]  }
 0x19d   :  { %3060 = vmatpush1.bf16.msra.mxu0 %v5024_v44  ;;  %3347 = vmatpush1.bf16.msra.mxu1 %v5027_v45  ;;  %v5119_v44 = vld [vmem:[#allocation5 + $0xac8] ss:$16 sps:$4 sm:$0xff]   ;;  %v5124_v45 = vld [vmem:[#allocation5 + $0xae4] ss:$16 sps:$4 sm:$0xff]  }
 0x19e   :  { %3061 = vmatprep.subr.bf16.mxu0 %v5032_v46  ;;  %3348 = vmatprep.subr.bf16.mxu1 %v5035_v47  ;;  %v5127_v46 = vld [vmem:[#allocation5 + $0xaec] ss:$16 sps:$4 sm:$0xff]   ;;  %v5122_v47 = vld [vmem:[#allocation5 + $0xae0] ss:$16 sps:$4 sm:$0xff]  }
 0x1a1   :  { %3062 = vmatpush1.bf16.msra.mxu0 %v5030_v48  ;;  %3349 = vmatpush1.bf16.msra.mxu1 %v5033_v49  ;;  %v5125_v48 = vld [vmem:[#allocation5 + $0xae8] ss:$16 sps:$4 sm:$0xff]   ;;  %v5130_v49 = vld [vmem:[#allocation5 + $0xb04] ss:$16 sps:$4 sm:$0xff]  }
 0x1a2   :  { %3063 = vmatprep.subr.bf16.mxu0 %v5038_v50  ;;  %3350 = vmatprep.subr.bf16.mxu1 %v5041_v51  ;;  %v5133_v50 = vld [vmem:[#allocation5 + $0xb0c] ss:$16 sps:$4 sm:$0xff]   ;;  %v5128_v51 = vld [vmem:[#allocation5 + $0xb00] ss:$16 sps:$4 sm:$0xff]  }
 0x1a5   :  { %3064 = vmatpush1.bf16.msra.mxu0 %v5036_v52  ;;  %3351 = vmatpush1.bf16.msra.mxu1 %v5039_v53  ;;  %v5131_v52 = vld [vmem:[#allocation5 + $0xb08] ss:$16 sps:$4 sm:$0xff]   ;;  %v5136_v53 = vld [vmem:[#allocation5 + $0xb24] ss:$16 sps:$4 sm:$0xff]  }
 0x1a6   :  { %3065 = vmatprep.subr.bf16.mxu0 %v5044_v54  ;;  %3352 = vmatprep.subr.bf16.mxu1 %v5047_v55  ;;  %v5139_v54 = vld [vmem:[#allocation5 + $0xb2c] ss:$16 sps:$4 sm:$0xff]   ;;  %v5134_v55 = vld [vmem:[#allocation5 + $0xb20] ss:$16 sps:$4 sm:$0xff]  }
 0x1a9   :  { %3066 = vmatpush1.bf16.msra.mxu0 %v5042_v56  ;;  %3353 = vmatpush1.bf16.msra.mxu1 %v5045_v57  ;;  %v5137_v56 = vld [vmem:[#allocation5 + $0xb28] ss:$16 sps:$4 sm:$0xff]   ;;  %v5142_v57 = vld [vmem:[#allocation5 + $0xb44] ss:$16 sps:$4 sm:$0xff]  }
 0x1aa   :  { %3067 = vmatprep.subr.bf16.mxu0 %v5050_v58  ;;  %3354 = vmatprep.subr.bf16.mxu1 %v5053_v59  ;;  %v5145_v58 = vld [vmem:[#allocation5 + $0xb4c] ss:$16 sps:$4 sm:$0xff]   ;;  %v5140_v59 = vld [vmem:[#allocation5 + $0xb40] ss:$16 sps:$4 sm:$0xff]  }
 0x1ad   :  { %3068 = vmatpush1.bf16.msra.mxu0 %v5048_v60  ;;  %3355 = vmatpush1.bf16.msra.mxu1 %v5051_v61  ;;  %v5143_v60 = vld [vmem:[#allocation5 + $0xb48] ss:$16 sps:$4 sm:$0xff]   ;;  %v5148_v61 = vld [vmem:[#allocation5 + $0xb64] ss:$16 sps:$4 sm:$0xff]  }
 0x1ae   :  { %3069 = vmatprep.subr.bf16.mxu0 %v5056_v62  ;;  %3356 = vmatprep.subr.bf16.mxu1 %v5059_v63  ;;  %v5151_v62 = vld [vmem:[#allocation5 + $0xb6c] ss:$16 sps:$4 sm:$0xff]   ;;  %v5146_v63 = vld [vmem:[#allocation5 + $0xb60] ss:$16 sps:$4 sm:$0xff]  }
 0x1b1   :  { %3070 = vmatpush1.bf16.msra.mxu0 %v5054_v0  ;;  %3357 = vmatpush1.bf16.msra.mxu1 %v5057_v1  ;;  %v5149_v0 = vld [vmem:[#allocation5 + $0xb68] ss:$16 sps:$4 sm:$0xff]   ;;  %v5154_v1 = vld [vmem:[#allocation5 + $0xb84] ss:$16 sps:$4 sm:$0xff]  }
 0x1b2   :  { %3071 = vmatprep.subr.bf16.mxu0 %v5062_v2  ;;  %3358 = vmatprep.subr.bf16.mxu1 %v5065_v3  ;;  %v5157_v2 = vld [vmem:[#allocation5 + $0xb8c] ss:$16 sps:$4 sm:$0xff]   ;;  %v5152_v3 = vld [vmem:[#allocation5 + $0xb80] ss:$16 sps:$4 sm:$0xff]  }
 0x1b5   :  { %3072 = vmatpush1.bf16.msra.mxu0 %v5060_v4  ;;  %3359 = vmatpush1.bf16.msra.mxu1 %v5063_v5  ;;  %v5155_v4 = vld [vmem:[#allocation5 + $0xb88] ss:$16 sps:$4 sm:$0xff]   ;;  %v5160_v5 = vld [vmem:[#allocation5 + $0xba4] ss:$16 sps:$4 sm:$0xff]  }
 0x1b6   :  { %3073 = vmatprep.subr.bf16.mxu0 %v5068_v6  ;;  %3360 = vmatprep.subr.bf16.mxu1 %v5071_v7  ;;  %v5163_v6 = vld [vmem:[#allocation5 + $0xbac] ss:$16 sps:$4 sm:$0xff]   ;;  %v5158_v7 = vld [vmem:[#allocation5 + $0xba0] ss:$16 sps:$4 sm:$0xff]  }
 0x1b9   :  { %3074 = vmatpush1.bf16.msra.mxu0 %v5066_v8  ;;  %3361 = vmatpush1.bf16.msra.mxu1 %v5069_v9  ;;  %v5161_v8 = vld [vmem:[#allocation5 + $0xba8] ss:$16 sps:$4 sm:$0xff]   ;;  %v5166_v9 = vld [vmem:[#allocation5 + $0xbc4] ss:$16 sps:$4 sm:$0xff]  }
 0x1ba   :  { %3075 = vmatprep.subr.bf16.mxu0 %v5074_v10  ;;  %3362 = vmatprep.subr.bf16.mxu1 %v5077_v12  ;;  %v5169_v10 = vld [vmem:[#allocation5 + $0xbcc] ss:$16 sps:$4 sm:$0xff]   ;;  %v5164_v12 = vld [vmem:[#allocation5 + $0xbc0] ss:$16 sps:$4 sm:$0xff]  }
 0x1bd   :  { %3076 = vmatpush1.bf16.msra.mxu0 %v5072_v13  ;;  %3363 = vmatpush1.bf16.msra.mxu1 %v5075_v15  ;;  %v5167_v13 = vld [vmem:[#allocation5 + $0xbc8] ss:$16 sps:$4 sm:$0xff]   ;;  %v5172_v15 = vld [vmem:[#allocation5 + $0xbe4] ss:$16 sps:$4 sm:$0xff]  }
 0x1be   :  { %3086 = vmatprep.subr.bf16.mxu0 %v5082_v16  ;;  %3373 = vmatprep.subr.bf16.mxu1 %v5085_v18  ;;  %v5175_v16 = vld [vmem:[#allocation5 + $0xbec] ss:$16 sps:$4 sm:$0xff]   ;;  %v5170_v18 = vld [vmem:[#allocation5 + $0xbe0] ss:$16 sps:$4 sm:$0xff]  }
 0x1c0   :  { %3078 = vmatmul.mubr.bf16.vlgmr.msra.gmra.mrb[0].mxu0 %v3955_v11  ;;  %3365 = vmatmul.mubr.bf16.vlgmr.msra.gmra.mrb[0].mxu1 %v3955_v11  ;;  %v5183_v11 = vld [vmem:[#allocation5 + $0xc0c] ss:$16 sps:$4 sm:$0xff]  }
 0x1c1   :  { %3087 = vmatpush1.bf16.msra.mxu0 %v5080_v19  ;;  %3374 = vmatpush1.bf16.msra.mxu1 %v5083_v20  ;;  %v5173_v19 = vld [vmem:[#allocation5 + $0xbe8] ss:$16 sps:$4 sm:$0xff]   ;;  %v5180_v20 = vld [vmem:[#allocation5 + $0xc04] ss:$16 sps:$4 sm:$0xff]  }
 0x1c2   :  { %3088 = vmatprep.subr.bf16.mxu0 %v5088_v21  ;;  %3375 = vmatprep.subr.bf16.mxu1 %v5091_v22  ;;  %v3957_v21 = vcombine.low %v5668_v14, %v5668_v14  ;;  %v5674_v22 = vld [vmem:[#allocation2 + $0x30] sm:$0xff]  ;;  %v5192_v14 = vld [vmem:[#allocation5 + $0xc44] ss:$16 sps:$4 sm:$0xff]  }
 0x1c3   :  { %3118 = vmatprep.mubr.bf16.mxu0 %v3958_v23  ;;  %3405 = vmatprep.mubr.bf16.mxu1 %v3958_v23  ;;  %v5178_v23 = vld [vmem:[#allocation5 + $0xc00] ss:$16 sps:$4 sm:$0xff]  }
 0x1c5   :  { %3089 = vmatpush1.bf16.msra.mxu0 %v5086_v24  ;;  %3376 = vmatpush1.bf16.msra.mxu1 %v5089_v25  ;;  %v5181_v24 = vld [vmem:[#allocation5 + $0xc08] ss:$16 sps:$4 sm:$0xff]   ;;  %v5186_v25 = vld [vmem:[#allocation5 + $0xc24] ss:$16 sps:$4 sm:$0xff]  }
 0x1c6   :  { %3090 = vmatprep.subr.bf16.mxu0 %v5094_v17  ;;  %3377 = vmatprep.subr.bf16.mxu1 %v5097_v26  ;;  %v5189_v17 = vld [vmem:[#allocation5 + $0xc2c] ss:$16 sps:$4 sm:$0xff]   ;;  %v3960_v26 = vcombine.high %v5674_v22, %v5674_v22 }
 0x1c9   :  { %3091 = vmatpush1.bf16.msra.mxu0 %v5092_v27  ;;  %3378 = vmatpush1.bf16.msra.mxu1 %v5095_v28  ;;  %v5184_v27 = vld [vmem:[#allocation5 + $0xc20] ss:$16 sps:$4 sm:$0xff]   ;;  %v5187_v28 = vld [vmem:[#allocation5 + $0xc28] ss:$16 sps:$4 sm:$0xff]  }
 0x1ca   :  { %3092 = vmatprep.subr.bf16.mxu0 %v5100_v29  ;;  %3379 = vmatprep.subr.bf16.mxu1 %v5103_v30  ;;  %v5195_v29 = vld [vmem:[#allocation5 + $0xc4c] ss:$16 sps:$4 sm:$0xff]   ;;  %v5190_v30 = vld [vmem:[#allocation5 + $0xc40] ss:$16 sps:$4 sm:$0xff]  }
 0x1cd   :  { %3093 = vmatpush1.bf16.msra.mxu0 %v5098_v31  ;;  %3380 = vmatpush1.bf16.msra.mxu1 %v5101_v32  ;;  %v5193_v31 = vld [vmem:[#allocation5 + $0xc48] ss:$16 sps:$4 sm:$0xff]   ;;  %v5198_v32 = vld [vmem:[#allocation5 + $0xc64] ss:$16 sps:$4 sm:$0xff]  }
 0x1ce   :  { %3094 = vmatprep.subr.bf16.mxu0 %v5106_v33  ;;  %3381 = vmatprep.subr.bf16.mxu1 %v5109_v34  ;;  %v5201_v33 = vld [vmem:[#allocation5 + $0xc6c] ss:$16 sps:$4 sm:$0xff]   ;;  %v5196_v34 = vld [vmem:[#allocation5 + $0xc60] ss:$16 sps:$4 sm:$0xff]  }
 0x1d1   :  { %3095 = vmatpush1.bf16.msra.mxu0 %v5104_v35  ;;  %3382 = vmatpush1.bf16.msra.mxu1 %v5107_v36  ;;  %v5199_v35 = vld [vmem:[#allocation5 + $0xc68] ss:$16 sps:$4 sm:$0xff]   ;;  %v5204_v36 = vld [vmem:[#allocation5 + $0xc84] ss:$16 sps:$4 sm:$0xff]  }
 0x1d2   :  { %3096 = vmatprep.subr.bf16.mxu0 %v5112_v37  ;;  %3383 = vmatprep.subr.bf16.mxu1 %v5115_v38  ;;  %v5207_v37 = vld [vmem:[#allocation5 + $0xc8c] ss:$16 sps:$4 sm:$0xff]   ;;  %v5202_v38 = vld [vmem:[#allocation5 + $0xc80] ss:$16 sps:$4 sm:$0xff]  }
 0x1d5   :  { %3097 = vmatpush1.bf16.msra.mxu0 %v5110_v39  ;;  %3384 = vmatpush1.bf16.msra.mxu1 %v5113_v40  ;;  %v5205_v39 = vld [vmem:[#allocation5 + $0xc88] ss:$16 sps:$4 sm:$0xff]   ;;  %v5210_v40 = vld [vmem:[#allocation5 + $0xca4] ss:$16 sps:$4 sm:$0xff]  }
 0x1d6   :  { %3098 = vmatprep.subr.bf16.mxu0 %v5118_v41  ;;  %3385 = vmatprep.subr.bf16.mxu1 %v5121_v42  ;;  %v5213_v41 = vld [vmem:[#allocation5 + $0xcac] ss:$16 sps:$4 sm:$0xff]   ;;  %v5208_v42 = vld [vmem:[#allocation5 + $0xca0] ss:$16 sps:$4 sm:$0xff]  }
 0x1d9   :  { %3099 = vmatpush1.bf16.msra.mxu0 %v5116_v43  ;;  %3386 = vmatpush1.bf16.msra.mxu1 %v5119_v44  ;;  %v5211_v43 = vld [vmem:[#allocation5 + $0xca8] ss:$16 sps:$4 sm:$0xff]   ;;  %v5216_v44 = vld [vmem:[#allocation5 + $0xcc4] ss:$16 sps:$4 sm:$0xff]  }
 0x1da   :  { %3100 = vmatprep.subr.bf16.mxu0 %v5124_v45  ;;  %3387 = vmatprep.subr.bf16.mxu1 %v5127_v46  ;;  %v5219_v45 = vld [vmem:[#allocation5 + $0xccc] ss:$16 sps:$4 sm:$0xff]   ;;  %v5214_v46 = vld [vmem:[#allocation5 + $0xcc0] ss:$16 sps:$4 sm:$0xff]  }
 0x1dd   :  { %3101 = vmatpush1.bf16.msra.mxu0 %v5122_v47  ;;  %3388 = vmatpush1.bf16.msra.mxu1 %v5125_v48  ;;  %v5217_v47 = vld [vmem:[#allocation5 + $0xcc8] ss:$16 sps:$4 sm:$0xff]   ;;  %v5222_v48 = vld [vmem:[#allocation5 + $0xce4] ss:$16 sps:$4 sm:$0xff]  }
 0x1de   :  { %3102 = vmatprep.subr.bf16.mxu0 %v5130_v49  ;;  %3389 = vmatprep.subr.bf16.mxu1 %v5133_v50  ;;  %v5225_v49 = vld [vmem:[#allocation5 + $0xcec] ss:$16 sps:$4 sm:$0xff]   ;;  %v5220_v50 = vld [vmem:[#allocation5 + $0xce0] ss:$16 sps:$4 sm:$0xff]  }
 0x1e1   :  { %3103 = vmatpush1.bf16.msra.mxu0 %v5128_v51  ;;  %3390 = vmatpush1.bf16.msra.mxu1 %v5131_v52  ;;  %v5223_v51 = vld [vmem:[#allocation5 + $0xce8] ss:$16 sps:$4 sm:$0xff]   ;;  %v5228_v52 = vld [vmem:[#allocation5 + $0xd04] ss:$16 sps:$4 sm:$0xff]  }
 0x1e2   :  { %3104 = vmatprep.subr.bf16.mxu0 %v5136_v53  ;;  %3391 = vmatprep.subr.bf16.mxu1 %v5139_v54  ;;  %v5231_v53 = vld [vmem:[#allocation5 + $0xd0c] ss:$16 sps:$4 sm:$0xff]   ;;  %v5226_v54 = vld [vmem:[#allocation5 + $0xd00] ss:$16 sps:$4 sm:$0xff]  }
 0x1e5   :  { %3105 = vmatpush1.bf16.msra.mxu0 %v5134_v55  ;;  %3392 = vmatpush1.bf16.msra.mxu1 %v5137_v56  ;;  %v5229_v55 = vld [vmem:[#allocation5 + $0xd08] ss:$16 sps:$4 sm:$0xff]   ;;  %v5234_v56 = vld [vmem:[#allocation5 + $0xd24] ss:$16 sps:$4 sm:$0xff]  }
 0x1e6   :  { %3106 = vmatprep.subr.bf16.mxu0 %v5142_v57  ;;  %3393 = vmatprep.subr.bf16.mxu1 %v5145_v58  ;;  %v5237_v57 = vld [vmem:[#allocation5 + $0xd2c] ss:$16 sps:$4 sm:$0xff]   ;;  %v5232_v58 = vld [vmem:[#allocation5 + $0xd20] ss:$16 sps:$4 sm:$0xff]  }
 0x1e9   :  { %3107 = vmatpush1.bf16.msra.mxu0 %v5140_v59  ;;  %3394 = vmatpush1.bf16.msra.mxu1 %v5143_v60  ;;  %v5235_v59 = vld [vmem:[#allocation5 + $0xd28] ss:$16 sps:$4 sm:$0xff]   ;;  %v5240_v60 = vld [vmem:[#allocation5 + $0xd44] ss:$16 sps:$4 sm:$0xff]  }
 0x1ea   :  { %3108 = vmatprep.subr.bf16.mxu0 %v5148_v61  ;;  %3395 = vmatprep.subr.bf16.mxu1 %v5151_v62  ;;  %v5243_v61 = vld [vmem:[#allocation5 + $0xd4c] ss:$16 sps:$4 sm:$0xff]   ;;  %v5238_v62 = vld [vmem:[#allocation5 + $0xd40] ss:$16 sps:$4 sm:$0xff]  }
 0x1ed   :  { %3109 = vmatpush1.bf16.msra.mxu0 %v5146_v63  ;;  %3396 = vmatpush1.bf16.msra.mxu1 %v5149_v0  ;;  %v5241_v63 = vld [vmem:[#allocation5 + $0xd48] ss:$16 sps:$4 sm:$0xff]   ;;  %v5246_v0 = vld [vmem:[#allocation5 + $0xd64] ss:$16 sps:$4 sm:$0xff]  }
 0x1ee   :  { %3110 = vmatprep.subr.bf16.mxu0 %v5154_v1  ;;  %3397 = vmatprep.subr.bf16.mxu1 %v5157_v2  ;;  %v5249_v1 = vld [vmem:[#allocation5 + $0xd6c] ss:$16 sps:$4 sm:$0xff]   ;;  %v5244_v2 = vld [vmem:[#allocation5 + $0xd60] ss:$16 sps:$4 sm:$0xff]  }
 0x1f1   :  { %3111 = vmatpush1.bf16.msra.mxu0 %v5152_v3  ;;  %3398 = vmatpush1.bf16.msra.mxu1 %v5155_v4  ;;  %v5247_v3 = vld [vmem:[#allocation5 + $0xd68] ss:$16 sps:$4 sm:$0xff]   ;;  %v5252_v4 = vld [vmem:[#allocation5 + $0xd84] ss:$16 sps:$4 sm:$0xff]  }
 0x1f2   :  { %3112 = vmatprep.subr.bf16.mxu0 %v5160_v5  ;;  %3399 = vmatprep.subr.bf16.mxu1 %v5163_v6  ;;  %v5255_v5 = vld [vmem:[#allocation5 + $0xd8c] ss:$16 sps:$4 sm:$0xff]   ;;  %v5250_v6 = vld [vmem:[#allocation5 + $0xd80] ss:$16 sps:$4 sm:$0xff]  }
 0x1f5   :  { %3113 = vmatpush1.bf16.msra.mxu0 %v5158_v7  ;;  %3400 = vmatpush1.bf16.msra.mxu1 %v5161_v8  ;;  %v5253_v7 = vld [vmem:[#allocation5 + $0xd88] ss:$16 sps:$4 sm:$0xff]   ;;  %v5258_v8 = vld [vmem:[#allocation5 + $0xda4] ss:$16 sps:$4 sm:$0xff]  }
 0x1f6   :  { %3114 = vmatprep.subr.bf16.mxu0 %v5166_v9  ;;  %3401 = vmatprep.subr.bf16.mxu1 %v5169_v10  ;;  %v5261_v9 = vld [vmem:[#allocation5 + $0xdac] ss:$16 sps:$4 sm:$0xff]   ;;  %v5256_v10 = vld [vmem:[#allocation5 + $0xda0] ss:$16 sps:$4 sm:$0xff]  }
 0x1f9   :  { %3115 = vmatpush1.bf16.msra.mxu0 %v5164_v12  ;;  %3402 = vmatpush1.bf16.msra.mxu1 %v5167_v13  ;;  %v5259_v12 = vld [vmem:[#allocation5 + $0xda8] ss:$16 sps:$4 sm:$0xff]   ;;  %v5264_v13 = vld [vmem:[#allocation5 + $0xdc4] ss:$16 sps:$4 sm:$0xff]  }
 0x1fa   :  { %3116 = vmatprep.subr.bf16.mxu0 %v5172_v15  ;;  %3403 = vmatprep.subr.bf16.mxu1 %v5175_v16  ;;  %v5267_v15 = vld [vmem:[#allocation5 + $0xdcc] ss:$16 sps:$4 sm:$0xff]   ;;  %v5262_v16 = vld [vmem:[#allocation5 + $0xdc0] ss:$16 sps:$4 sm:$0xff]  }
 0x1fd   :  { %3117 = vmatpush1.bf16.msra.mxu0 %v5170_v18  ;;  %3404 = vmatpush1.bf16.msra.mxu1 %v5173_v19  ;;  %v5265_v18 = vld [vmem:[#allocation5 + $0xdc8] ss:$16 sps:$4 sm:$0xff]   ;;  %v5270_v19 = vld [vmem:[#allocation5 + $0xde4] ss:$16 sps:$4 sm:$0xff]  }
 0x1fe   :  { %3127 = vmatprep.subr.bf16.mxu0 %v5180_v20  ;;  %3414 = vmatprep.subr.bf16.mxu1 %v5183_v11  ;;  %v5273_v20 = vld [vmem:[#allocation5 + $0xdec] ss:$16 sps:$4 sm:$0xff]   ;;  %v5268_v11 = vld [vmem:[#allocation5 + $0xde0] ss:$16 sps:$4 sm:$0xff]  }
 0x200   :  { %3119 = vmatmul.mubr.bf16.vlgmr.msra.gmra.mrb[0].mxu0 %v3957_v21  ;;  %3406 = vmatmul.mubr.bf16.vlgmr.msra.gmra.mrb[0].mxu1 %v3957_v21  ;;  %v5271_v21 = vld [vmem:[#allocation5 + $0xde8] ss:$16 sps:$4 sm:$0xff]  }
 0x201   :  { %3128 = vmatpush1.bf16.msra.mxu0 %v5178_v23  ;;  %3415 = vmatpush1.bf16.msra.mxu1 %v5181_v24  ;;  %v5276_v23 = vld [vmem:[#allocation8 + $0x40] sm:$0xff]  }
 0x202   :  { %3129 = vmatprep.subr.bf16.mxu0 %v5186_v25  ;;  %3416 = vmatprep.subr.bf16.mxu1 %v5189_v17  ;;  %v5277_v24 = vld [vmem:[#allocation8 + $0xc0] sm:$0xff]   ;;  %v3959_v25 = vcombine.low %v5674_v22, %v5674_v22  ;;  %v5286_v22 = vld [vmem:[#allocation8 + $0x10] sm:$0xff]  }
 0x203   :  { %3159 = vmatprep.mubr.bf16.mxu0 %v3960_v26  ;;  %3446 = vmatprep.mubr.bf16.mxu1 %v3960_v26  ;;  %v5278_v17 = vld [vmem:[#allocation8] sm:$0xff]  }
 0x204   :  { %v5279_v26 = vld [vmem:[#allocation8 + $0x80] sm:$0xff]  }
 0x205   :  { %3130 = vmatpush1.bf16.msra.mxu0 %v5184_v27  ;;  %3417 = vmatpush1.bf16.msra.mxu1 %v5187_v28  ;;  %v5280_v27 = vld [vmem:[#allocation8 + $0x48] sm:$0xff]  }
 0x206   :  { %3131 = vmatprep.subr.bf16.mxu0 %v5192_v14  ;;  %3418 = vmatprep.subr.bf16.mxu1 %v5195_v29  ;;  %v5281_v28 = vld [vmem:[#allocation8 + $0xc8] sm:$0xff]  }
 0x207   :  { %v5282_v14 = vld [vmem:[#allocation8 + $0x8] sm:$0xff]  }
 0x208   :  { %v5283_v29 = vld [vmem:[#allocation8 + $0x88] sm:$0xff]  }
 0x209   :  { %3132 = vmatpush1.bf16.msra.mxu0 %v5190_v30  ;;  %3419 = vmatpush1.bf16.msra.mxu1 %v5193_v31  ;;  %v5284_v30 = vld [vmem:[#allocation8 + $0x50] sm:$0xff]  }
 0x20a   :  { %3133 = vmatprep.subr.bf16.mxu0 %v5198_v32  ;;  %3420 = vmatprep.subr.bf16.mxu1 %v5201_v33  ;;  %v5285_v31 = vld [vmem:[#allocation8 + $0xd0] sm:$0xff]   ;;  %v5288_v33 = vld [vmem:[#allocation8 + $0x58] sm:$0xff]  }
 0x20b   :  { %v5287_v32 = vld [vmem:[#allocation8 + $0x90] sm:$0xff]  }
 0x20d   :  { %3134 = vmatpush1.bf16.msra.mxu0 %v5196_v34  ;;  %3421 = vmatpush1.bf16.msra.mxu1 %v5199_v35  ;;  %v5289_v34 = vld [vmem:[#allocation8 + $0xd8] sm:$0xff]  }
 0x20e   :  { %3135 = vmatprep.subr.bf16.mxu0 %v5204_v36  ;;  %3422 = vmatprep.subr.bf16.mxu1 %v5207_v37  ;;  %v5290_v35 = vld [vmem:[#allocation8 + $0x18] sm:$0xff]   ;;  %v5292_v37 = vld [vmem:[#allocation8 + $0x60] sm:$0xff]  }
 0x20f   :  { %v5291_v36 = vld [vmem:[#allocation8 + $0x98] sm:$0xff]  }
 0x211   :  { %3136 = vmatpush1.bf16.msra.mxu0 %v5202_v38  ;;  %3423 = vmatpush1.bf16.msra.mxu1 %v5205_v39  ;;  %v5293_v38 = vld [vmem:[#allocation8 + $0xe0] sm:$0xff]  }
 0x212   :  { %3137 = vmatprep.subr.bf16.mxu0 %v5210_v40  ;;  %3424 = vmatprep.subr.bf16.mxu1 %v5213_v41  ;;  %v5294_v39 = vld [vmem:[#allocation8 + $0x20] sm:$0xff]   ;;  %v5296_v41 = vld [vmem:[#allocation8 + $0x68] sm:$0xff]  }
 0x213   :  { %v5295_v40 = vld [vmem:[#allocation8 + $0xa0] sm:$0xff]  }
 0x215   :  { %3138 = vmatpush1.bf16.msra.mxu0 %v5208_v42  ;;  %3425 = vmatpush1.bf16.msra.mxu1 %v5211_v43  ;;  %v5297_v42 = vld [vmem:[#allocation8 + $0xe8] sm:$0xff]  }
 0x216   :  { %3139 = vmatprep.subr.bf16.mxu0 %v5216_v44  ;;  %3426 = vmatprep.subr.bf16.mxu1 %v5219_v45  ;;  %v5298_v43 = vld [vmem:[#allocation8 + $0x28] sm:$0xff]   ;;  %v5300_v45 = vld [vmem:[#allocation8 + $0x70] sm:$0xff]  }
 0x217   :  { %v5299_v44 = vld [vmem:[#allocation8 + $0xa8] sm:$0xff]  }
 0x219   :  { %3140 = vmatpush1.bf16.msra.mxu0 %v5214_v46  ;;  %3427 = vmatpush1.bf16.msra.mxu1 %v5217_v47  ;;  %v5301_v46 = vld [vmem:[#allocation8 + $0xf0] sm:$0xff]  }
 0x21a   :  { %3141 = vmatprep.subr.bf16.mxu0 %v5222_v48  ;;  %3428 = vmatprep.subr.bf16.mxu1 %v5225_v49  ;;  %v5302_v47 = vld [vmem:[#allocation8 + $0x30] sm:$0xff]   ;;  %v5304_v49 = vld [vmem:[#allocation8 + $0x78] sm:$0xff]  }
 0x21b   :  { %v5303_v48 = vld [vmem:[#allocation8 + $0xb0] sm:$0xff]  }
 0x21d   :  { %3142 = vmatpush1.bf16.msra.mxu0 %v5220_v50  ;;  %3429 = vmatpush1.bf16.msra.mxu1 %v5223_v51  ;;  %v5305_v50 = vld [vmem:[#allocation8 + $0xf8] sm:$0xff]  }
 0x21e   :  { %3143 = vmatprep.subr.bf16.mxu0 %v5228_v52  ;;  %3430 = vmatprep.subr.bf16.mxu1 %v5231_v53  ;;  %v5306_v51 = vld [vmem:[#allocation8 + $0x38] sm:$0xff]   ;;  %v5517_v53 = vmov 0.0  }
 0x21f   :  { %v5307_v52 = vld [vmem:[#allocation8 + $0xb8] sm:$0xff]  }
 0x221   :  { %3144 = vmatpush1.bf16.msra.mxu0 %v5226_v54  ;;  %3431 = vmatpush1.bf16.msra.mxu1 %v5229_v55  ;;  %v572_v54 = vlaneseq }
 0x222   :  { %3145 = vmatprep.subr.bf16.mxu0 %v5234_v56  ;;  %3432 = vmatprep.subr.bf16.mxu1 %v5237_v57 }
 0x223   :  { %v573_v55 = vshrl.u32 %v572_v54, 7 }
 0x225   :  { %3146 = vmatpush1.bf16.msra.mxu0 %v5232_v58  ;;  %3433 = vmatpush1.bf16.msra.mxu1 %v5235_v59  ;;  %v574_v56 = vsub.s32 0, %v573_v55  ;;  %v582_v57 = vsub.s32 2, %v573_v55  ;;  %v570_v58 = vld [vmem:[#allocation7] sm:$0xf]  ;;  %v578_v59 = vsub.s32 1, %v573_v55 }
 0x226   :  { %3147 = vmatprep.subr.bf16.mxu0 %v5240_v60  ;;  %3434 = vmatprep.subr.bf16.mxu1 %v5243_v61  ;;  %v586_v60 = vsub.s32 3, %v573_v55 }
 0x227   :  { %v575_v61 = vrot.slane %v570_v58, %v574_v56 }
 0x229   :  { %3148 = vmatpush1.bf16.msra.mxu0 %v5238_v62  ;;  %3435 = vmatpush1.bf16.msra.mxu1 %v5241_v63  ;;  %v583_v62 = vrot.slane %v570_v58, %v582_v57  ;;  %v579_v63 = vrot.slane %v570_v58, %v578_v59 }
 0x22a   :  { %3149 = vmatprep.subr.bf16.mxu0 %v5246_v0  ;;  %3436 = vmatprep.subr.bf16.mxu1 %v5249_v1  ;;  %v587_v0 = vrot.slane %v570_v58, %v586_v60 }
 0x22d   :  { %3150 = vmatpush1.bf16.msra.mxu0 %v5244_v2  ;;  %3437 = vmatpush1.bf16.msra.mxu1 %v5247_v3 }
 0x22e   :  { %3151 = vmatprep.subr.bf16.mxu0 %v5252_v4  ;;  %3438 = vmatprep.subr.bf16.mxu1 %v5255_v5 }
 0x231   :  { %3152 = vmatpush1.bf16.msra.mxu0 %v5250_v6  ;;  %3439 = vmatpush1.bf16.msra.mxu1 %v5253_v7 }
 0x232   :  { %3153 = vmatprep.subr.bf16.mxu0 %v5258_v8  ;;  %3440 = vmatprep.subr.bf16.mxu1 %v5261_v9 }
 0x235   :  { %3154 = vmatpush1.bf16.msra.mxu0 %v5256_v10  ;;  %3441 = vmatpush1.bf16.msra.mxu1 %v5259_v12 }
 0x236   :  { %3155 = vmatprep.subr.bf16.mxu0 %v5264_v13  ;;  %3442 = vmatprep.subr.bf16.mxu1 %v5267_v15 }
 0x239   :  { %3156 = vmatpush1.bf16.msra.mxu0 %v5262_v16  ;;  %3443 = vmatpush1.bf16.msra.mxu1 %v5265_v18 }
 0x23a   :  { %3157 = vmatprep.subr.bf16.mxu0 %v5270_v19  ;;  %3444 = vmatprep.subr.bf16.mxu1 %v5273_v20 }
 0x23d   :  { %3158 = vmatpush1.bf16.msra.mxu0 %v5268_v11  ;;  %3445 = vmatpush1.bf16.msra.mxu1 %v5271_v21  ;;  %v5308_v21 = vld [vmem:[#allocation11] sm:$0xff]  }
 0x23e   :  { %4451 = vmatprep.subr.bf16.mxu0 %v5276_v23  ;;  %4473 = vmatprep.subr.bf16.mxu1 %v5277_v24 }
 0x240   :  { %3160 = vmatmul.mubr.bf16.vlgmr.msra.gmra.mrb[0].mxu0 %v3959_v25  ;;  %3447 = vmatmul.mubr.bf16.vlgmr.msra.gmra.mrb[0].mxu1 %v3959_v25  ;;  %v5309_v25 = vld [vmem:[#allocation11 + $0x8] sm:$0xff]  }
 0x241   :  { %4452 = vmatpush3.bf16.msra.mxu0 %v5278_v17  ;;  %4474 = vmatpush3.bf16.msra.mxu1 %v5279_v26  ;;  %v5310_v17 = vld [vmem:[#allocation11 + $0x10] sm:$0xff]   ;;  %v5311_v26 = vld [vmem:[#allocation11 + $0x18] sm:$0xff]  }
 0x242   :  { %4453 = vmatprep.subr.bf16.mxu0 %v5280_v27  ;;  %4475 = vmatprep.subr.bf16.mxu1 %v5281_v28  ;;  %v5312_v27 = vld [vmem:[#allocation11 + $0x20] sm:$0xff]   ;;  %v5313_v28 = vld [vmem:[#allocation11 + $0x28] sm:$0xff]  }
 0x245   :  { %4454 = vmatpush3.bf16.msra.mxu0 %v5282_v14  ;;  %4476 = vmatpush3.bf16.msra.mxu1 %v5283_v29  ;;  %v5314_v14 = vld [vmem:[#allocation11 + $0x30] sm:$0xff]   ;;  %v5315_v29 = vld [vmem:[#allocation11 + $0x38] sm:$0xff]  }
 0x246   :  { %4455 = vmatprep.subr.bf16.mxu0 %v5284_v30  ;;  %4477 = vmatprep.subr.bf16.mxu1 %v5285_v31 }
 0x249   :  { %4456 = vmatpush3.bf16.msra.mxu0 %v5286_v22  ;;  %4478 = vmatpush3.bf16.msra.mxu1 %v5287_v32  ;;  %v4409_v22 = vld [vmem:[#allocation10] ss:$0 sm:$0xff] }
 0x24a   :  { %4457 = vmatprep.subr.bf16.mxu0 %v5288_v33  ;;  %4479 = vmatprep.subr.bf16.mxu1 %v5289_v34 }
 0x24d   :  { %4458 = vmatpush3.bf16.msra.mxu0 %v5290_v35  ;;  %4480 = vmatpush3.bf16.msra.mxu1 %v5291_v36 }
 0x24e   :  { %4459 = vmatprep.subr.bf16.mxu0 %v5292_v37  ;;  %4481 = vmatprep.subr.bf16.mxu1 %v5293_v38 }
 0x251   :  { %4460 = vmatpush3.bf16.msra.mxu0 %v5294_v39  ;;  %4482 = vmatpush3.bf16.msra.mxu1 %v5295_v40 }
 0x252   :  { %4461 = vmatprep.subr.bf16.mxu0 %v5296_v41  ;;  %4483 = vmatprep.subr.bf16.mxu1 %v5297_v42 }
 0x255   :  { %4462 = vmatpush3.bf16.msra.mxu0 %v5298_v43  ;;  %4484 = vmatpush3.bf16.msra.mxu1 %v5299_v44  ;;  %v4442_v44 = vld [vmem:[#allocation13] ss:$0 sm:$0xff] }
 0x256   :  { %4463 = vmatprep.subr.bf16.mxu0 %v5300_v45  ;;  %4485 = vmatprep.subr.bf16.mxu1 %v5301_v46 }
 0x259   :  { %4464 = vmatpush3.bf16.msra.mxu0 %v5302_v47  ;;  %4486 = vmatpush3.bf16.msra.mxu1 %v5303_v48 }
 0x25a   :  { %4465 = vmatprep.subr.bf16.mxu0 %v5304_v49  ;;  %4487 = vmatprep.subr.bf16.mxu1 %v5305_v50 }
 0x25d   :  { %4466 = vmatpush3.bf16.msra.mxu0 %v5306_v51  ;;  %4488 = vmatpush3.bf16.msra.mxu1 %v5307_v52 }
 0x25e   :  { %4504 = vmatprep.subr.bf16.mxu0 %v5517_v53 }
 0x313   :  { %v3161_v1 = vpop.f32.mrb[0].mxu0  ;;  %v3448_v2 = vpop.f32.mrb[0].mxu1 }
 0x314   :  { %v4524_v3 = vadd.f32 %v3161_v1, %v575_v61  ;;  %v4526_v4 = vadd.f32 %v3448_v2, %v583_v62  ;;  %v3163_v5 = vpop.f32.mrb[1].mxu0  ;;  %v3450_v6 = vpop.f32.mrb[1].mxu1 }
 0x315   :  { %v4525_v7 = vadd.f32 %v3163_v5, %v579_v63  ;;  %v4527_v8 = vadd.f32 %v3450_v6, %v587_v0  ;;  %v3165_v9 = vpop.f32.mrb[2].mxu0  ;;  %v3452_v10 = vpop.f32.mrb[2].mxu1 }
 0x316   :  { %v3455_v12 = vmax.f32 %v4524_v3, 0.0  ;;  %v3457_v13 = vmax.f32 %v4526_v4, 0.0  ;;  %v3166_v15 = vpop.f32.mrb[3].mxu0  ;;  %v3453_v16 = vpop.f32.mrb[3].mxu1 }
 0x317   :  { %v3456_v18 = vmax.f32 %v4525_v7, 0.0  ;;  %v3458_v19 = vmax.f32 %v4527_v8, 0.0 }
 0x318   :  { %v3459_v23 = vpack.c.bf16 %v3455_v12, %v3455_v12  ;;  %v3461_v24 = vpack.c.bf16 %v3457_v13, %v3457_v13 }
 0x319   :  { %v3460_v20 = vpack.c.bf16 %v3456_v18, %v3456_v18  ;;  %v3462_v11 = vpack.c.bf16 %v3458_v19, %v3458_v19 }
 0x31b   :  { %3758 = vmatprep.mubr.bf16.mxu0 %v3460_v20  ;;  %3798 = vmatprep.mubr.bf16.mxu1 %v3462_v11 }
 0x31c   :  { %3759 = vmatmul.mubr.bf16.vlgmr.msra.gmra.mrb[4].mxu0 %v3459_v23  ;;  %3799 = vmatmul.mubr.bf16.vlgmr.msra.gmra.mrb[4].mxu1 %v3461_v24 }
 0x31d   :  { %4505 = vmatpush3.bf16.msra.mxu0 %v5308_v21  ;;  %4520 = vmatprep.mubr.msk.bf16.mxu0 %vm5518_vm0, %v5517_v53 }
 0x31e   :  { %4506 = vmatprep.subr.bf16.mxu0 %v5517_v53 }
 0x321   :  { %4507 = vmatpush3.bf16.msra.mxu0 %v5309_v25 }
 0x322   :  { %4508 = vmatprep.subr.bf16.mxu0 %v5517_v53 }
 0x325   :  { %4509 = vmatpush3.bf16.msra.mxu0 %v5310_v17 }
 0x326   :  { %4510 = vmatprep.subr.bf16.mxu0 %v5517_v53 }
 0x329   :  { %4511 = vmatpush3.bf16.msra.mxu0 %v5311_v26 }
 0x32a   :  { %4512 = vmatprep.subr.bf16.mxu0 %v5517_v53 }
 0x32d   :  { %4513 = vmatpush3.bf16.msra.mxu0 %v5312_v27 }
 0x32e   :  { %4514 = vmatprep.subr.bf16.mxu0 %v5517_v53 }
 0x331   :  { %4515 = vmatpush3.bf16.msra.mxu0 %v5313_v28 }
 0x332   :  { %4516 = vmatprep.subr.bf16.mxu0 %v5517_v53 }
 0x335   :  { %4517 = vmatpush3.bf16.msra.mxu0 %v5314_v14 }
 0x336   :  { %4518 = vmatprep.subr.bf16.mxu0 %v5517_v53 }
 0x339   :  { %4519 = vmatpush3.bf16.msra.mxu0 %v5315_v29 }
 0x3ef   :  { %v4467_v30 = vpop.f32.mrb[4].mxu0  ;;  %v4489_v31 = vpop.f32.mrb[4].mxu1 }
 0x3f0   :  { %v4468_v32 = vpop.f32.mrb[5].mxu0  ;;  %v4490_v33 = vpop.f32.mrb[5].mxu1 }
 0x3f1   :  { %v4469_v34 = vadd.f32 %v4468_v32, %v4467_v30  ;;  %v4491_v35 = vadd.f32 %v4490_v33, %v4489_v31  ;;  %v4470_v36 = vpop.f32.mrb[6].mxu0  ;;  %v4492_v37 = vpop.f32.mrb[6].mxu1 }
 0x3f2   :  { %v4471_v38 = vpop.f32.mrb[7].mxu0  ;;  %v4493_v39 = vpop.f32.mrb[7].mxu1 }
 0x3f3   :  { %v3761_v40 = vadd.f32 %v4469_v34, %v4409_v22 }
 0x3f5   :  { %v3801_v41 = vadd.f32 %v4491_v35, %v3761_v40 }
 0x3f7   :  { %v3806_v42 = vmax.f32 %v3801_v41, 0.0 }
 0x3f9   :  { %v3807_v43 = vpack.c.bf16 %v3806_v42, %v3806_v42 }
 0x3fb   :  { %4521 = vmatmul.mubr.bf16.vlgmr.msra.gmra.mrb[8].mxu0 %v3807_v43 }
 0x4ce   :  { %v3913_v45 = vpop.f32.mrb[8].mxu0 }
 0x4cf   :  { %v3914_v46 = vadd.f32 %v4442_v44, %v3913_v45  ;;  %v4522_v47 = vpop.f32.mrb[9].mxu0 }
 0x4d0   :  { %v3916_v48 = vpop.f32.mrb[10].mxu0 }
 0x4d1   :  { %3919 = vmax.xlane.f32.xlu0 %v3914_v46  ;;  %v4523_v49 = vpop.f32.mrb[11].mxu0 }
 0x55e   :  { %v3920_v50 = vpop.xlane.xlu0 %3919 }
 0x55f   :  { %v3921_v51 = vsub.f32 %v3914_v46, %v3920_v50 }
 0x561   :  { %v3922_v52 = vmul.f32 1.442695, %v3921_v51 }
 0x563   :  { %5316 = vpow2.f32 %v3922_v52 }
 0x56d   :  { %v5317_v53 = vpop.eup %5316 }
 0x56e   :  { %3924 = vadd.xlane.f32.xlu0 %v5317_v53 }
 0x5fb   :  { %v3925_v54 = vpop.xlane.xlu0 %3924 }
 0x5fc   :  { %5318 = vrcp.f32 %v3925_v54 }
 0x606   :  { %v5319_v55 = vpop.eup %5318 }
 0x607   :  { %v3927_v56 = vmul.f32 %v5319_v55, %v5317_v53 }
 0x609   :  { %3928 = vst [vmem:[#allocation14] sm:$0xff] %v3927_v56 }
 0x60a   :  { %5485 = shalt.err (!%p5482_p4)
}
 0x60b   :  { %s5486_s15 = scalar_lea.hbm %s5699_s7, 128 }
 0x60c   :  { %p5487_p5 = scmp.ne.s32.totalorder %s5699_s7, %s5486_s15  ;;  %p5490_p6 = scmp.lt.u32.totalorder %s5486_s15, %s5699_s7 }
 0x60e   :  { %p5492_p7 = pnand %p5490_p6, %p5487_p5 }
 0x610   :  { %5495 = shalt.err (!%p5492_p7)
}
 0x611   :  { %3938 = dma.vmem_to_hbm [thread:$0]  %s3936_s13, 128, %s5699_s7, [#allocation4]  }
 0x612   :  { %5504 = dma.done.wait [#allocation4], 128  }
 0x613   :  { %5505 = vsyncadd [#allocation4], 4294967168 }
 0x614   :  { %3942 = vsyncpa [#allocation3], 1 }
 0x615   :  { %3943 = vsyncpa [#allocation6], 1 }
 0x616   :  { %3944 = vsyncpa [#allocation9], 1 }
 0x617   :  { %3945 = vsyncpa [#allocation12], 1 }
 0x618   :  { %3946 = vsyncpa [#allocation4], 1 }

</bundles_post_ra>
